<compile_context>
chip_gen: v7x
topology: tpu7x:2x2x1
jax: 0.10.0
libtpu: 0.0.40
codegen_flags: <defaults>
</compile_context>

<pallas_src>
import functools

import jax
import jax.numpy as jnp
from jax.experimental import pallas as pl
from jax.experimental.pallas import tpu as pltpu

_LANE = 128


def _round_up(x, m):
    return (x + m - 1) // m * m


def _leaky_relu(x, slope=0.2):
    # slope < 1  ->  leaky_relu(x) == max(x, slope*x): mul+max instead of cmp+select.
    return jnp.maximum(x, slope * x)


def _elu(x):
    # exp only sees the non-positive branch (avoids inf on large activations).
    return jnp.where(x > 0, x, jnp.exp(jnp.minimum(x, 0.0)) - 1.0)


# ---------------------------------------------------------------------------
# Kernel 1: per-layer linear transform + attention scores (grid over node rows)
# ---------------------------------------------------------------------------
def _gat_transform_kernel(x_ref, w_ref, am_ref, h_ref, asT_ref, ad_ref, *, heads):
    # h = x @ W : (TM, F_out) on the MXU, f32 accumulation.
    h = jnp.dot(x_ref[...], w_ref[...], preferred_element_type=jnp.float32)
    # Emit h in bf16: MXU-native operand for the aggregation matmul and half
    # the resident VMEM / inter-kernel HBM traffic.
    h_ref[...] = h.astype(jnp.bfloat16)
    # All-head [dst | src] attention scores with ONE MXU matmul: (TM, 2*heads).
    alpha = jnp.dot(h, am_ref[...], preferred_element_type=jnp.float32)
    ad_ref[...] = alpha[:, :heads]                          # destination scores
    # Single lane->sublane transpose of ALL source scores (one XLU op, one store).
    asT_ref[...] = jnp.transpose(alpha[:, heads:2 * heads])  # (heads, TM)


def _gat_transform(x_p, w_p, a_mat, *, tm, heads, vmem_limit):
    n_p, f_in = x_p.shape
    f_out = w_p.shape[1]
    kernel = functools.partial(_gat_transform_kernel, heads=heads)
    return pl.pallas_call(
        kernel,
        grid=(n_p // tm,),
        in_specs=[
            pl.BlockSpec((tm, f_in), lambda i: (i, 0)),
            pl.BlockSpec((f_in, f_out), lambda i: (0, 0)),
            pl.BlockSpec((f_out, 2 * heads), lambda i: (0, 0)),
        ],
        out_specs=[
            pl.BlockSpec((tm, f_out), lambda i: (i, 0)),
            pl.BlockSpec((heads, tm), lambda i: (0, i)),
            pl.BlockSpec((tm, heads), lambda i: (i, 0)),
        ],
        out_shape=[
            jax.ShapeDtypeStruct((n_p, f_out), jnp.bfloat16),   # h (bf16)
            jax.ShapeDtypeStruct((heads, n_p), jnp.float32),    # src scores (transposed)
            jax.ShapeDtypeStruct((n_p, heads), jnp.float32),    # dst scores
        ],
        compiler_params=pltpu.CompilerParams(
            dimension_semantics=("parallel",),
            vmem_limit_bytes=vmem_limit),
    )(x_p, w_p, a_mat)


# ---------------------------------------------------------------------------
# Kernel 2: masked softmax attention + aggregation (grid over destination tiles)
# ---------------------------------------------------------------------------
def _gat_attention_kernel(adj_ref, h_ref, asT_ref, ad_ref, b_ref, o_ref, *,
                          heads, out_dim, apply_elu, approx_recip):
    # Hoisted out of the head loop: one bf16->f32 convert of the adjacency tile.
    adj = adj_ref[...].astype(jnp.float32)                  # (TM, Np)
    asT = asT_ref[...]                                      # (heads, Np) f32
    ad = ad_ref[...]                                        # (TM, heads) f32
    # Cheap per-head upper bound on the row max: ONE small (heads, Np) reduce
    # per tile instead of a (TM, Np) cross-lane max per head.  Since leaky-ReLU
    # is monotone, m >= e everywhere, so exp(e - m) <= 1 (numerically safe).
    max_s = jnp.max(asT, axis=1, keepdims=True)             # (heads, 1)
    for hd in range(heads):
        a_s = asT[hd:hd + 1, :]                             # (1, Np)  source scores
        a_d = ad[:, hd:hd + 1]                              # (TM, 1)  dest scores
        m = _leaky_relu(a_d + max_s[hd:hd + 1, :])          # (TM, 1) row-max bound
        e = _leaky_relu(a_d + a_s)                          # (TM, Np)
        # Multiplicative mask after exp (no -1e30 additive-bias tensor).
        p = jnp.exp(e - m) * adj                            # (TM, Np)
        # Guard fully-masked padded rows (denominator 0) against inf/NaN.
        denom = jnp.maximum(jnp.sum(p, axis=1, keepdims=True), 1e-20)
        inv = pl.reciprocal(denom, approx=approx_recip)     # (TM, 1)
        hh = h_ref[:, hd * out_dim:(hd + 1) * out_dim]      # (Np, out_dim) bf16, 128-lane aligned
        # bf16 x bf16 MXU matmul, f32 accumulation; normalize the small (TM, out)
        # result instead of the (TM, Np) probabilities.
        acc = jnp.dot(p.astype(jnp.bfloat16), hh,
                      preferred_element_type=jnp.float32)
        res = acc * inv + b_ref[0:1, hd * out_dim:(hd + 1) * out_dim]
        if apply_elu:
            res = _elu(res)
        # Write each head directly into its 128-lane-aligned column slice.
        o_ref[:, hd * out_dim:(hd + 1) * out_dim] = res


def _gat_attention(adj_p, h, asT, ad, b_p, *, tm, heads, out_dim, apply_elu,
                   approx_recip, vmem_limit):
    n_p = adj_p.shape[0]
    f_out = h.shape[1]
    assert heads * out_dim == f_out
    kernel = functools.partial(_gat_attention_kernel, heads=heads,
                               out_dim=out_dim, apply_elu=apply_elu,
                               approx_recip=approx_recip)
    return pl.pallas_call(
        kernel,
        grid=(n_p // tm,),
        in_specs=[
            pl.BlockSpec((tm, n_p), lambda i: (i, 0)),      # adj: only O(N^2) tensor, tiled
            pl.BlockSpec((n_p, f_out), lambda i: (0, 0)),   # h (bf16): resident
            pl.BlockSpec((heads, n_p), lambda i: (0, 0)),   # src scores: resident
            pl.BlockSpec((tm, heads), lambda i: (i, 0)),    # dst scores: per-tile
            pl.BlockSpec((1, f_out), lambda i: (0, 0)),     # bias: resident
        ],
        out_specs=pl.BlockSpec((tm, f_out), lambda i: (i, 0)),  # 128-lane dense
        out_shape=jax.ShapeDtypeStruct((n_p, f_out), jnp.float32),
        compiler_params=pltpu.CompilerParams(
            dimension_semantics=("parallel",),              # megacore on v7x
            vmem_limit_bytes=vmem_limit),
    )(adj_p, h, asT, ad, b_p)


# ---------------------------------------------------------------------------
# Wrapper: padding, tile selection, parameter packing
# ---------------------------------------------------------------------------
def _device_vmem_bytes():
    try:
        info = pltpu.get_tpu_info()
        v = int(getattr(info, "vmem_capacity_bytes", 0))
        if v > 0:
            return v
    except Exception:
        pass
    return 64 * 1024 * 1024                      # conservative (v7x-sized) fallback


def _pick_dst_tile(n_p, f_out_max, heads_max, vmem_limit):
    """Destination-node tile derived from the per-core VMEM budget.

    Counts the resident tensors (bf16 h, f32 src-score rows, bias) plus, per
    destination row per grid step: two double-buffered bf16 adjacency tiles,
    ~4 live (TM, Np) f32 temporaries of the unrolled head loop, the bf16 copy
    of the attention probabilities fed to the MXU, and the double-buffered
    f32 output tile.  ~25% of the limit is left as headroom for Mosaic
    internal scratch / pipeline buffers.
    """
    resident = n_p * f_out_max * 2 + heads_max * n_p * 4 + 4 * f_out_max * 4
    budget = int(vmem_limit * 0.75) - resident
    per_row = n_p * (2 * 2 + 4 * 4 + 2) + 2 * f_out_max * 4
    tm = (budget // max(per_row, 1)) // _LANE * _LANE
    return int(max(_LANE, min(tm, n_p)))


def _att_matrix(a_src_pad, a_dst_pad, heads, od_pad):
    """(heads*od_pad, 2*heads) block-diagonal matrix so h @ M yields all per-head
    attention scores (columns [0:heads]=dst, [heads:2*heads]=src) in one matmul."""
    m = jnp.zeros((heads * od_pad, 2 * heads), jnp.float32)
    for hd in range(heads):
        sl = slice(hd * od_pad, (hd + 1) * od_pad)
        m = m.at[sl, hd].set(a_dst_pad[hd])
        m = m.at[sl, heads + hd].set(a_src_pad[hd])
    return m


def gnn_encoder(x, adj, params, *, heads1, hidden_dim, output_dim, dst_tile=None):
    """Forward pass of GNNEncoder (eval mode) on TPU via Pallas kernels.

    Precondition: every node has at least one incoming edge (self-loops are
    included, matching PyG's add_self_loops=True), so every real softmax row
    has a non-zero denominator; fully-padded rows are guarded in-kernel.
    """
    n, input_dim = x.shape
    f32 = jnp.float32

    # Padded sizes: per-head output width padded to a FULL 128 lanes so every
    # per-head slice of h / o is lane-dense (unmasked stores, full MXU columns).
    fin_p = _round_up(input_dim, _LANE)
    hid_p = _round_up(hidden_dim, _LANE)
    f1_p = heads1 * hid_p                    # layer-1 concat width (mult of 128)
    f2_p = _round_up(output_dim, _LANE)      # lane-dense final output block

    # VMEM budget: ~80% of physical, capped at 112 MiB (v5e/v6e ~102 MiB,
    # v7x ~51 MiB per TensorCore); same number drives compiler limit and tiling.
    vmem_limit = min(int(_device_vmem_bytes() * 0.8), 112 * 1024 * 1024)

    n_p0 = _round_up(n, _LANE)
    f_out_max = max(f1_p, f2_p)
    if dst_tile is None:
        tm = _pick_dst_tile(n_p0, f_out_max, heads1, vmem_limit)
    else:
        tm = int(dst_tile)
    tm = max(_LANE, min(_round_up(tm, _LANE), n_p0))
    n_p = _round_up(n, tm)

    # Padded inputs; adj shipped as bf16 (0/1 mask) to halve HBM/VMEM traffic.
    x_p = jnp.zeros((n_p, fin_p), f32).at[:n, :input_dim].set(x)
    adj_p = jnp.zeros((n_p, n_p), f32).at[:n, :n].set(adj).astype(jnp.bfloat16)

    # Layer-1 params (per-head column padding keeps head slices 128-aligned).
    w1 = params["w1"].reshape(input_dim, heads1, hidden_dim)
    w1_p = (jnp.zeros((fin_p, heads1, hid_p), f32)
            .at[:input_dim, :, :hidden_dim].set(w1).reshape(fin_p, f1_p))
    a_s1 = jnp.zeros((heads1, hid_p), f32).at[:, :hidden_dim].set(params["a_src1"])
    a_d1 = jnp.zeros((heads1, hid_p), f32).at[:, :hidden_dim].set(params["a_dst1"])
    am1 = _att_matrix(a_s1, a_d1, heads1, hid_p)
    b1 = params["b1"].reshape(heads1, hidden_dim)
    b1_p = (jnp.zeros((heads1, hid_p), f32).at[:, :hidden_dim].set(b1)
            .reshape(1, f1_p))

    # Layer-2 params.
    w2 = params["w2"].reshape(heads1, hidden_dim, output_dim)
    w2_p = (jnp.zeros((heads1, hid_p, f2_p), f32)
            .at[:, :hidden_dim, :output_dim].set(w2).reshape(f1_p, f2_p))
    a_s2 = jnp.zeros((1, f2_p), f32).at[:, :output_dim].set(params["a_src2"])
    a_d2 = jnp.zeros((1, f2_p), f32).at[:, :output_dim].set(params["a_dst2"])
    am2 = _att_matrix(a_s2, a_d2, 1, f2_p)
    b2_p = jnp.zeros((1, f2_p), f32).at[:, :output_dim].set(params["b2"])

    # Layer 1: GATConv(input -> hidden, heads=heads1, concat) + ELU (fused).
    h1, asT1, ad1 = _gat_transform(x_p, w1_p, am1, tm=tm, heads=heads1,
                                   vmem_limit=vmem_limit)
    z1 = _gat_attention(adj_p, h1, asT1, ad1, b1_p, tm=tm, heads=heads1,
                        out_dim=hid_p, apply_elu=True, approx_recip=True,
                        vmem_limit=vmem_limit)
    # TODO(synk): Dropout(0.1) between layers is identity in eval mode (omitted).

    # Layer 2: GATConv(heads1*hidden -> output, heads=1); exact reciprocal in the
    # final layer's softmax (approx only in layer 1).
    h2, asT2, ad2 = _gat_transform(z1, w2_p, am2, tm=tm, heads=1,
                                   vmem_limit=vmem_limit)
    z2 = _gat_attention(adj_p, h2, asT2, ad2, b2_p, tm=tm, heads=1,
                        out_dim=f2_p, apply_elu=False, approx_recip=False,
                        vmem_limit=vmem_limit)

    return z2[:n, :output_dim]


# ---------------------------------------------------------------------------
# Pure-JAX reference (same math) for correctness check.
# ---------------------------------------------------------------------------
def _gat_layer_ref(x, adj, w, a_src, a_dst, bias, heads, out_dim):
    h = x @ w
    outs = []
    for hd in range(heads):
        hh = h[:, hd * out_dim:(hd + 1) * out_dim]
        alpha_s = jnp.sum(hh * a_src[hd], axis=-1, keepdims=True)
        alpha_d = jnp.sum(hh * a_dst[hd], axis=-1, keepdims=True)
        score = alpha_d + alpha_s.T
        e = jnp.where(adj > 0, jnp.where(score > 0, score, 0.2 * score), -1e30)
        att = jax.nn.softmax(e, axis=1)
        outs.append(att @ hh)
    out = outs[0] if heads == 1 else jnp.concatenate(outs, axis=-1)
    return out + bias


def gnn_encoder_ref(x, adj, p, heads1, hidden_dim, output_dim):
    h1 = _gat_layer_ref(x, adj, p["w1"], p["a_src1"], p["a_dst1"], p["b1"],
                        heads1, hidden_dim)
    h1 = jnp.where(h1 > 0, h1, jnp.exp(h1) - 1.0)
    return _gat_layer_ref(h1, adj, p["w2"], p["a_src2"], p["a_dst2"], p["b2"],
                          1, output_dim)


if __name__ == "__main__":
    # Small shapes consistent with the module.
    N = 200           # number of graph nodes
    input_dim = 16
    hidden_dim = 32
    output_dim = 16
    heads1 = 4

    key = jax.random.PRNGKey(0)
    k_x, k_e, k_w1, k_a1, k_w2, k_a2 = jax.random.split(key, 6)

    # Node features.
    x = jax.random.normal(k_x, (N, input_dim), dtype=jnp.float32)

    # Random edge_index (2, E); dense adjacency adj[dst, src] with self-loops
    # (matches PyG GATConv add_self_loops=True; guarantees every softmax row
    # has at least one unmasked entry).
    E = 800
    edge_index = jax.random.randint(k_e, (2, E), 0, N)
    adj = jnp.zeros((N, N), dtype=jnp.float32)
    adj = adj.at[edge_index[1], edge_index[0]].set(1.0)
    adj = jnp.maximum(adj, jnp.eye(N, dtype=jnp.float32))

    # Deterministic parameter init (glorot-ish scaling).
    def glorot(k, shape):
        fan_in, fan_out = shape[0], shape[-1]
        s = jnp.sqrt(6.0 / (fan_in + fan_out))
        return jax.random.uniform(k, shape, jnp.float32, -s, s)

    k_a1s, k_a1d = jax.random.split(k_a1)
    k_a2s, k_a2d = jax.random.split(k_a2)
    params = {
        "w1": glorot(k_w1, (input_dim, heads1 * hidden_dim)),
        "a_src1": glorot(k_a1s, (heads1, hidden_dim)),
        "a_dst1": glorot(k_a1d, (heads1, hidden_dim)),
        "b1": jnp.zeros((1, heads1 * hidden_dim), jnp.float32),
        "w2": glorot(k_w2, (heads1 * hidden_dim, output_dim)),
        "a_src2": glorot(k_a2s, (1, output_dim)),
        "a_dst2": glorot(k_a2d, (1, output_dim)),
        "b2": jnp.zeros((1, output_dim), jnp.float32),
    }

    # dst_tile=128 keeps the example multi-tile (N=200 -> padded to 256 -> 2 dst
    # tiles) so the grid/pipeline path is exercised even at toy size.
    out = gnn_encoder(x, adj, params, heads1=heads1, hidden_dim=hidden_dim,
                      output_dim=output_dim, dst_tile=128)
    out = jax.block_until_ready(out)

    ref = gnn_encoder_ref(x, adj, params, heads1, hidden_dim, output_dim)
    assert out.shape == (N, output_dim)
    # Tolerance accounts for bf16 MXU operands (h, attention probabilities) and
    # the approximate EUP reciprocal in the layer-1 softmax denominator.
    assert jnp.allclose(out, ref, atol=2e-2, rtol=2e-2), "mismatch vs JAX reference"

    print("KERNEL_OK")
</pallas_src>

<mosaic_0001>
module attributes {stable_mosaic.version = 11 : i64} {
  func.func @_gat_transform_kernel(%arg0: i32, %arg1: memref<128x128xf32, #tpu.memory_space<vmem>>, %arg2: memref<128x512xf32, #tpu.memory_space<vmem>>, %arg3: memref<512x8xf32, #tpu.memory_space<vmem>>, %arg4: memref<128x512xbf16, #tpu.memory_space<vmem>>, %arg5: memref<4x128xf32, #tpu.memory_space<vmem>>, %arg6: memref<128x4xf32, #tpu.memory_space<vmem>>) attributes {dimension_semantics = [#tpu.dimension_semantics<parallel>], iteration_bounds = array<i64: 2>, scalar_prefetch = 0 : i64, scratch_operands = 0 : i64, tpu.core_type = #tpu.core_type<tc>, window_params = [{transform_indices = @transform_0, window_bounds = array<i64: 128, 128>}, {pipeline_mode = #tpu.pipeline_mode<synchronous>, transform_indices = @transform_1, window_bounds = array<i64: 128, 512>}, {pipeline_mode = #tpu.pipeline_mode<synchronous>, transform_indices = @transform_2, window_bounds = array<i64: 512, 8>}, {transform_indices = @transform_3, window_bounds = array<i64: 128, 512>}, {transform_indices = @transform_4, window_bounds = array<i64: 4, 128>}, {transform_indices = @transform_5, window_bounds = array<i64: 128, 4>}]} {
    %c0 = arith.constant 0 : index
    %c0_0 = arith.constant 0 : index
    %0 = vector.load %arg1[%c0, %c0_0] : memref<128x128xf32, #tpu.memory_space<vmem>>, vector<128x128xf32>
    %c0_1 = arith.constant 0 : index
    %c0_2 = arith.constant 0 : index
    %1 = vector.load %arg2[%c0_1, %c0_2] : memref<128x512xf32, #tpu.memory_space<vmem>>, vector<128x512xf32>
    %cst = arith.constant dense<0.000000e+00> : vector<128x512xf32>
    %2 = tpu.matmul %0, %1, %cst {dimension_numbers = #tpu.dot_dimension_numbers<[1], [0], [0], [1], [0, 0, 1, 1], [], []>} : vector<128x128xf32>, vector<128x512xf32>, vector<128x512xf32> -> vector<128x512xf32>
    %3 = arith.truncf %2 : vector<128x512xf32> to vector<128x512xbf16>
    %c0_3 = arith.constant 0 : index
    %c0_4 = arith.constant 0 : index
    %4 = vector.load %arg4[%c0_3, %c0_4] : memref<128x512xbf16, #tpu.memory_space<vmem>>, vector<128x512xbf16>
    tpu.vector_store %arg4[%c0_3, %c0_4], %3 {strides = array<i32>} : memref<128x512xbf16, #tpu.memory_space<vmem>>, vector<128x512xbf16>,
    %c0_5 = arith.constant 0 : index
    %c0_6 = arith.constant 0 : index
    %5 = vector.load %arg3[%c0_5, %c0_6] : memref<512x8xf32, #tpu.memory_space<vmem>>, vector<512x8xf32>
    %cst_7 = arith.constant dense<0.000000e+00> : vector<128x8xf32>
    %6 = tpu.matmul %2, %5, %cst_7 {dimension_numbers = #tpu.dot_dimension_numbers<[1], [0], [0], [1], [0, 0, 1, 1], [], []>} : vector<128x512xf32>, vector<512x8xf32>, vector<128x8xf32> -> vector<128x8xf32>
    %7 = vector.extract_strided_slice %6 {offsets = [0, 0], sizes = [128, 4], strides = [1, 1]} : vector<128x8xf32> to vector<128x4xf32>
    %c0_8 = arith.constant 0 : index
    %c0_9 = arith.constant 0 : index
    %8 = vector.load %arg6[%c0_8, %c0_9] : memref<128x4xf32, #tpu.memory_space<vmem>>, vector<128x4xf32>
    tpu.vector_store %arg6[%c0_8, %c0_9], %7 {strides = array<i32>} : memref<128x4xf32, #tpu.memory_space<vmem>>, vector<128x4xf32>,
    %9 = vector.extract_strided_slice %6 {offsets = [0, 4], sizes = [128, 4], strides = [1, 1]} : vector<128x8xf32> to vector<128x4xf32>
    %10 = tpu.transpose %9, [1, 0] : vector<128x4xf32> -> vector<4x128xf32>
    %c0_10 = arith.constant 0 : index
    %c0_11 = arith.constant 0 : index
    %11 = vector.load %arg5[%c0_10, %c0_11] : memref<4x128xf32, #tpu.memory_space<vmem>>, vector<4x128xf32>
    tpu.vector_store %arg5[%c0_10, %c0_11], %10 {strides = array<i32>} : memref<4x128xf32, #tpu.memory_space<vmem>>, vector<4x128xf32>,
    return
  }
  func.func @transform_0(%arg0: i32) -> (i32, i32) {
    %c0_i32 = arith.constant 0 : i32
    %c0_i32_0 = arith.constant 0 : i32
    return %arg0, %c0_i32 : i32, i32
  }
  func.func @transform_1(%arg0: i32) -> (i32, i32) {
    %c0_i32 = arith.constant 0 : i32
    %c0_i32_0 = arith.constant 0 : i32
    %c0_i32_1 = arith.constant 0 : i32
    return %c0_i32, %c0_i32_0 : i32, i32
  }
  func.func @transform_2(%arg0: i32) -> (i32, i32) {
    %c0_i32 = arith.constant 0 : i32
    %c0_i32_0 = arith.constant 0 : i32
    %c0_i32_1 = arith.constant 0 : i32
    return %c0_i32, %c0_i32_0 : i32, i32
  }
  func.func @transform_3(%arg0: i32) -> (i32, i32) {
    %c0_i32 = arith.constant 0 : i32
    %c0_i32_0 = arith.constant 0 : i32
    return %arg0, %c0_i32 : i32, i32
  }
  func.func @transform_4(%arg0: i32) -> (i32, i32) {
    %c0_i32 = arith.constant 0 : i32
    %c0_i32_0 = arith.constant 0 : i32
    return %c0_i32, %arg0 : i32, i32
  }
  func.func @transform_5(%arg0: i32) -> (i32, i32) {
    %c0_i32 = arith.constant 0 : i32
    %c0_i32_0 = arith.constant 0 : i32
    return %arg0, %c0_i32 : i32, i32
  }
}

</mosaic_0001>

<bundles_post_ra>
// kernel: tpu_custom_call.1
= control target key start
LH: loop header
LB: loop body
LE: loop exit
PB: predicated region body
PF: predicated region fallthrough
CT: control target
= control target key end

     0   :  { %11 = vsyncpa [#allocation3], 0  ;;  %s2853_s0 = inlined_call_operand.hbm [shape: f32[256,128], index: 0, kind: input, shape index: {}]   ;;  %s2854_s1 = inlined_call_operand.vmem [shape: f32[128,512], index: 1, kind: input, shape index: {}]   ;;  %s2855_s2 = inlined_call_operand.vmem [shape: f32[512,8], index: 2, kind: input, shape index: {}]   ;;  %s2856_s3 = inlined_call_operand.hbm [shape: bf16[256,512], index: 3, kind: output, shape index: {0}]   ;;  %s2857_s4 = inlined_call_operand.hbm [shape: f32[4,256], index: 4, kind: output, shape index: {1}]   ;;  %s2858_s5 = inlined_call_operand.vmem [shape: f32[256,4], index: 5, kind: output, shape index: {2}]  }
   0x1   :  { %13 = vsyncpa [#allocation3 + $0x1], 0 }
   0x2   :  { %14 = vsyncpa [#allocation4], 0 }
   0x3   :  { %16 = vsyncpa [#allocation4 + $0x1], 0 }
   0x4   :  { %17 = vsyncpa [#allocation7], 0 }
   0x5   :  { %19 = vsyncpa [#allocation7 + $0x1], 0  ;;  %s2136_s18 = smov 0   ;;  %s2138_s19 = smov 0  }
   0x6   :  { %s2140_s20 = smov 0   ;;  %s2142_s21 = smov 0  }
   0x7 LB: > { %s2157_s22 = sadd.s32 4294967295, %s2095_s21   ;;  %s1535_s23 = sadd.s32 4294967294, %s2095_s21   ;;  %s2095_s21 = sphi %s2142_s21, %s2871_s21   ;;  %s2091_s20 = sphi %s2140_s20, %s2870_s20   ;;  %s2087_s19 = sphi %s2138_s19, %s2869_s19   ;;  %s2083_s18 = sphi %s2136_s18, %s2868_s18  }
   0x8   : > { %s2161_s24 = sadd.s32 1, %s2095_s21   ;;  %s32_s25 = sadd.s32 1, %s2091_s20 }
   0x9   : > { %s29_s26 = ssub.s32 %s2095_s21, %s2161_s24  ;;  %p39_p0 = scmp.ne.s32.totalorder %s2091_s20, %s2087_s19 }
   0xa   : > { %p30_p1 = scmp.eq.s32.totalorder %s29_s26, 0  ;;  %p40_p2 = scmp.eq.s32.totalorder %s2095_s21, 0 }
   0xb   : > { %p45_p3 = scmp.ne.s32.totalorder %s2087_s19, %s2083_s18  ;;  %p46_p4 = scmp.eq.s32.totalorder %s2157_s22, 0 }
   0xc   : > { %s2173_s27 = scalar_select %p30_p1, %s2091_s20, %s32_s25  }
   0xd   : > { %p2175_p5 = por %p40_p2, %p39_p0  ;;  %p2179_p6 = por %p46_p4, %p45_p3 }
   0xe   : > { %p111_p7 = scmp.eq.s32.totalorder %s2157_s22, 1  ;;  %p117_p8 = scmp.eq.s32.totalorder %s1535_s23, 1 }
   0xf   : > { %p1927_p10 = scmp.lt.s32.totalorder %s2095_s21, 2  ;;  %s195_s7 = sand.u32 1, %s2091_s20  }
  0x10   : > { %p2186_p11 = por %p111_p7, %p39_p0  ;;  %p2190_p12 = por %p117_p8, %p45_p3 }
  0x11   : > { %s1587_s8 = sshll.u32 %s2095_s21, 11  ;;  %s1538_s9 = sshll.u32 %s195_s7, 7 }
  0x12   : > { %s2862_s30 = scalar_select %p2186_p11, 1, 0 }
  0x13   : > { %s2863_s6 = scalar_select %p2190_p12, 1, 0 }
  0x14   : > { %s2199_s12 = scalar_lea.hbm %s2853_s0, %s1587_s8  ;;  %s199_s13 = scalar_lea.vmem [#allocation2], %s1538_s9 }
  0x15   : > { %s206_s14 = sshll.u32 %s199_s13, 4  ;;  %p2203_p13 = pnand %p1927_p10, %p2175_p5  ;;  %s2207_s14 = int_to_ptr.vmem [resolvable:$true] %s206_s14 }
  0x16   : > { %s2209_s16 = scalar_lea.sflag [#allocation3], %s195_s7  ;;  %s1967_s17 = scalar_lea.hbm %s2199_s12, 2048 }
  0x17   : > { %p1968_p0 = scmp.ne.s32.totalorder %s2199_s12, %s1967_s17  ;;  %p1969_p1 = pneg %p2203_p13 }
  0x18   : > { %s1972_s26 = scalar_lea.hbm %s2853_s0, 4096  ;;  %p1973_p4 = scmp.lt.u32.totalorder %s2199_s12, %s2853_s0 }
  0x19   : > { %p1970_p2 = pnand %p1969_p1, %p1968_p0  ;;  %p1974_p5 = scmp.lt.u32.totalorder %s1972_s26, %s1967_s17 }
  0x1a   : > { %p1976_p8 = scmp.lt.u32.totalorder %s1967_s17, %s2199_s12 }
  0x1b   : > { %p1971_p3 = pneg %p1970_p2  ;;  %p1975_p7 = por %p1974_p5, %p1973_p4 }
  0x1d   : > { %p1977_p10 = por %p1976_p8, %p1975_p7 }
  0x1f   : > { %p1978_p9 = pnand %p1977_p10, %p1971_p3 }
  0x21   : > { %1981 = shalt.err (!%p1978_p9)
}
  0x22   : > { %s1982_s7 = scalar_lea.vmem %s2207_s14, 2048  ;;  %s2097_s9 = smov [#allocation2]  }
  0x23   : > { %p1983_p0 = scmp.ne.s32.totalorder %s2207_s14, %s1982_s7  ;;  %s1987_s10 = sshll.u32 %s2097_s9, 4  ;;  %s1988_s10 = int_to_ptr.vmem [resolvable:$false] %s1987_s10 }
  0x24   : > { %s1989_s11 = scalar_lea.vmem %s1988_s10, 4096  ;;  %p1990_p11 = scmp.lt.s32.totalorder %s2207_s14, %s1988_s10 }
  0x25   : > { %p1985_p2 = pnand %p1983_p0, %p1969_p1  ;;  %p1991_p4 = scmp.lt.s32.totalorder %s1989_s11, %s1982_s7 }
  0x27   : > { %p1986_p12 = pneg %p1985_p2  ;;  %p1992_p5 = por %p1991_p4, %p1990_p11 }
  0x29   : > { %p1993_p7 = pnand %p1992_p5, %p1986_p12 }
  0x2b   : > { %1996 = shalt.err (!%p1993_p7)
}
  0x2c   : > { %s2098_s13 = smov 128   ;;  %s2099_s17 = smov 8  }
  0x2d   : > { %1919 = dma.hbm_to_vmem [thread:$0]  (!%p2203_p13), %s2199_s12, 2048, %s2207_s14, %s2209_s16, %s2098_s13, %s2098_s13, %s2099_s17  }
  0x2e   : > { %p1541_p9 = scmp.ge.s32.totalorder %s2095_s21, 1  ;;  %p214_p1 = scmp.lt.s32.totalorder %s2095_s21, 3 }
  0x30   : > { %p215_p3 = pnand %p1541_p9, %p214_p1 }
  0x31   : > { %s2240_s23 = sand.u32 (!%p215_p3), 1, %s2087_s19  }
  0x32   : > { %218 = sbr.rel (%p215_p3) target bundleno = 794 (0x31a), region = 32  ;;  %s1542_s25 = sshll.u32 (!%p215_p3), %s2240_s23, 7 }
  0x33   : > { %s221_s26 = scalar_lea.sflag (!%p215_p3), [#allocation3], %s2240_s23  ;;  %s2244_s28 = scalar_lea.vmem (!%p215_p3), [#allocation2], %s1542_s25 }
  0x39   : > { %2070 = dma.done.wait (%p2179_p6), %s221_s26, 2048  }
  0x3a   : > { %2072 = vsyncadd (%p2179_p6), %s221_s26, 4294965248  ;;  %v2100_v0 = vmov 0.0   ;;  %v286_v1 = vld [vmem:[%s2854_s1 + $0x8] sm:$0xff]  ;;  %v288_v3 = vld [vmem:[%s2854_s1 + $0x18] sm:$0xff]  ;;  %s1543_s8 = sshll.u32 %s2240_s23, 8  ;;  %vm1249_vm0 = vcmask 31744  }
  0x3b   : > { %413 = vmatprep.mubr.f32.mxu0 %v2100_v0  ;;  %574 = vmatprep.mubr.f32.mxu1 %v2100_v0  ;;  %v290_v2 = vld [vmem:[%s2854_s1 + $0x28] sm:$0xff]  ;;  %v292_v5 = vld [vmem:[%s2854_s1 + $0x38] sm:$0xff]  ;;  %v285_v6 = vld [vmem:[%s2854_s1] sm:$0xff]  ;;  %s2683_s7 = scalar_lea.vmem [#allocation5], %s1543_s8  ;;  %s2101_s13 = smov 124  }
  0x3c   : > { %v1782_v4 = vpack.c.bf16 %v290_v2, %v286_v1  ;;  %v289_v7 = vld [vmem:[%s2854_s1 + $0x20] sm:$0xff]  ;;  %v1814_v8 = vpack.c.bf16 %v292_v5, %v288_v3  ;;  %v287_v10 = vld [vmem:[%s2854_s1 + $0x10] sm:$0xff]  ;;  %v294_v12 = vld [vmem:[%s2854_s1 + $0x48] sm:$0xff]  ;;  %s1621_s17 = sshll.u32 %s2157_s22, 12  ;;  %s1388_s25 = sshll.u32 %s2683_s7, 4  ;;  %s2778_s25 = int_to_ptr.vmem [resolvable:$true] %s1388_s25 }
  0x3d   : > { %v1784_v9 = vpack.c.bf16 %v289_v7, %v285_v6  ;;  %v291_v11 = vld [vmem:[%s2854_s1 + $0x30] sm:$0xff]  ;;  %v298_v14 = vld [vmem:[%s2854_s1 + $0x68] sm:$0xff]  ;;  %v296_v15 = vld [vmem:[%s2854_s1 + $0x58] sm:$0xff]  ;;  %s2776_s14 = scalar_lea.hbm %s2856_s3, %s1621_s17  ;;  %s1364_s15 = scalar_lea.sflag [#allocation4], %s2240_s23 }
  0x3e   : > { %1783 = vmatprep.subr.bf16.mxu0 %v1782_v4  ;;  %v1816_v13 = vpack.c.bf16 %v291_v11, %v287_v10  ;;  %v300_v16 = vld [vmem:[%s2854_s1 + $0x78] sm:$0xff]  ;;  %1815 = vmatprep.subr.bf16.mxu1 %v1814_v8  ;;  %v1786_v17 = vpack.c.bf16 %v298_v14, %v294_v12  ;;  %v293_v19 = vld [vmem:[%s2854_s1 + $0x40] sm:$0xff]  ;;  %v295_v21 = vld [vmem:[%s2854_s1 + $0x50] sm:$0xff]  ;;  %s1997_s16 = scalar_lea.vmem %s2778_s25, 4096  ;;  %p2865_p12 = scmp.ne.s32.totalorder %s2862_s30, 0 }
  0x3f   : > { %1785 = vmatpush1.bf16.msra.mxu0 %v1784_v9  ;;  %v1818_v18 = vpack.c.bf16 %v300_v16, %v296_v15  ;;  %v297_v20 = vld [vmem:[%s2854_s1 + $0x60] sm:$0xff]  ;;  %v299_v23 = vld [vmem:[%s2854_s1 + $0x70] sm:$0xff]  ;;  %v302_v24 = vld [vmem:[%s2854_s1 + $0x88] sm:$0xff]  ;;  %p1998_p11 = scmp.ne.s32.totalorder %s2778_s25, %s1997_s16  ;;  %s2102_s8 = smov [#allocation5]  }
  0x40   : > { %1817 = vmatpush1.bf16.msra.mxu1 %v1816_v13  ;;  %v1788_v22 = vpack.c.bf16 %v297_v20, %v293_v19  ;;  %v306_v25 = vld [vmem:[%s2854_s1 + $0xa8] sm:$0xff]  ;;  %1787 = vmatprep.subr.bf16.mxu0 %v1786_v17  ;;  %v1820_v26 = vpack.c.bf16 %v299_v23, %v295_v21  ;;  %v304_v28 = vld [vmem:[%s2854_s1 + $0x98] sm:$0xff]  ;;  %v301_v30 = vld [vmem:[%s2854_s1 + $0x80] sm:$0xff] }
  0x41   : > { %1819 = vmatprep.subr.bf16.mxu1 %v1818_v18  ;;  %v1790_v27 = vpack.c.bf16 %v306_v25, %v302_v24  ;;  %v308_v29 = vld [vmem:[%s2854_s1 + $0xb8] sm:$0xff]  ;;  %v305_v32 = vld [vmem:[%s2854_s1 + $0xa0] sm:$0xff]  ;;  %v303_v33 = vld [vmem:[%s2854_s1 + $0x90] sm:$0xff]  ;;  %p1999_p13 = pnand %p1998_p11, %p2865_p12 }
  0x42   : > { %v1822_v31 = vpack.c.bf16 %v308_v29, %v304_v28  ;;  %v307_v34 = vld [vmem:[%s2854_s1 + $0xb0] sm:$0xff]  ;;  %v1792_v35 = vpack.c.bf16 %v305_v32, %v301_v30  ;;  %v310_v36 = vld [vmem:[%s2854_s1 + $0xc8] sm:$0xff]  ;;  %v312_v38 = vld [vmem:[%s2854_s1 + $0xd8] sm:$0xff] }
  0x43   : > { %1789 = vmatpush1.bf16.msra.mxu0 %v1788_v22  ;;  %v314_v37 = vld [vmem:[%s2854_s1 + $0xe8] sm:$0xff]  ;;  %v1824_v39 = vpack.c.bf16 %v307_v34, %v303_v33  ;;  %v316_v41 = vld [vmem:[%s2854_s1 + $0xf8] sm:$0xff]  ;;  %v309_v42 = vld [vmem:[%s2854_s1 + $0xc0] sm:$0xff]  ;;  %p2000_p8 = pneg %p1999_p13 }
  0x44   : > { %1821 = vmatpush1.bf16.msra.mxu1 %v1820_v26  ;;  %1791 = vmatprep.subr.bf16.mxu0 %v1790_v27  ;;  %v1794_v40 = vpack.c.bf16 %v314_v37, %v310_v36  ;;  %v313_v43 = vld [vmem:[%s2854_s1 + $0xe0] sm:$0xff]  ;;  %v1826_v44 = vpack.c.bf16 %v316_v41, %v312_v38  ;;  %v311_v45 = vld [vmem:[%s2854_s1 + $0xd0] sm:$0xff]  ;;  %v318_v47 = vld [vmem:[%s2854_s1 + $0x108] sm:$0xff] }
  0x45   : > { %1823 = vmatprep.subr.bf16.mxu1 %v1822_v31  ;;  %v315_v46 = vld [vmem:[%s2854_s1 + $0xf0] sm:$0xff]  ;;  %v322_v48 = vld [vmem:[%s2854_s1 + $0x128] sm:$0xff]  ;;  %v320_v49 = vld [vmem:[%s2854_s1 + $0x118] sm:$0xff]  ;;  %v1796_v51 = vpack.c.bf16 %v313_v43, %v309_v42 }
  0x46   : > { %v324_v50 = vld [vmem:[%s2854_s1 + $0x138] sm:$0xff]  ;;  %v1828_v52 = vpack.c.bf16 %v315_v46, %v311_v45  ;;  %v1798_v53 = vpack.c.bf16 %v322_v48, %v318_v47  ;;  %v317_v54 = vld [vmem:[%s2854_s1 + $0x100] sm:$0xff]  ;;  %v319_v56 = vld [vmem:[%s2854_s1 + $0x110] sm:$0xff] }
  0x47   : > { %1793 = vmatpush1.bf16.msra.mxu0 %v1792_v35  ;;  %v321_v55 = vld [vmem:[%s2854_s1 + $0x120] sm:$0xff]  ;;  %v1830_v57 = vpack.c.bf16 %v324_v50, %v320_v49  ;;  %v323_v58 = vld [vmem:[%s2854_s1 + $0x130] sm:$0xff]  ;;  %v326_v59 = vld [vmem:[%s2854_s1 + $0x148] sm:$0xff] }
  0x48   : > { %1825 = vmatpush1.bf16.msra.mxu1 %v1824_v39  ;;  %1795 = vmatprep.subr.bf16.mxu0 %v1794_v40  ;;  %v330_v60 = vld [vmem:[%s2854_s1 + $0x168] sm:$0xff]  ;;  %v328_v61 = vld [vmem:[%s2854_s1 + $0x158] sm:$0xff]  ;;  %v1800_v63 = vpack.c.bf16 %v321_v55, %v317_v54  ;;  %v1832_v1 = vpack.c.bf16 %v323_v58, %v319_v56  ;;  %v325_v3 = vld [vmem:[%s2854_s1 + $0x140] sm:$0xff] }
  0x49   : > { %1827 = vmatprep.subr.bf16.mxu1 %v1826_v44  ;;  %v332_v62 = vld [vmem:[%s2854_s1 + $0x178] sm:$0xff]  ;;  %v1802_v2 = vpack.c.bf16 %v330_v60, %v326_v59  ;;  %v329_v4 = vld [vmem:[%s2854_s1 + $0x160] sm:$0xff]  ;;  %v327_v5 = vld [vmem:[%s2854_s1 + $0x150] sm:$0xff] }
  0x4a   : > { %v1834_v6 = vpack.c.bf16 %v332_v62, %v328_v61  ;;  %v331_v7 = vld [vmem:[%s2854_s1 + $0x170] sm:$0xff]  ;;  %v334_v8 = vld [vmem:[%s2854_s1 + $0x188] sm:$0xff]  ;;  %v336_v10 = vld [vmem:[%s2854_s1 + $0x198] sm:$0xff]  ;;  %v1804_v12 = vpack.c.bf16 %v329_v4, %v325_v3 }
  0x4b   : > { %1797 = vmatpush1.bf16.msra.mxu0 %v1796_v51  ;;  %v338_v9 = vld [vmem:[%s2854_s1 + $0x1a8] sm:$0xff]  ;;  %v340_v11 = vld [vmem:[%s2854_s1 + $0x1b8] sm:$0xff]  ;;  %v1836_v13 = vpack.c.bf16 %v331_v7, %v327_v5  ;;  %v333_v15 = vld [vmem:[%s2854_s1 + $0x180] sm:$0xff] }
  0x4c   : > { %1829 = vmatpush1.bf16.msra.mxu1 %v1828_v52  ;;  %1799 = vmatprep.subr.bf16.mxu0 %v1798_v53  ;;  %v1806_v14 = vpack.c.bf16 %v338_v9, %v334_v8  ;;  %v337_v16 = vld [vmem:[%s2854_s1 + $0x1a0] sm:$0xff]  ;;  %v335_v17 = vld [vmem:[%s2854_s1 + $0x190] sm:$0xff]  ;;  %v1838_v18 = vpack.c.bf16 %v340_v11, %v336_v10  ;;  %v342_v20 = vld [vmem:[%s2854_s1 + $0x1c8] sm:$0xff] }
  0x4d   : > { %1831 = vmatprep.subr.bf16.mxu1 %v1830_v57  ;;  %v339_v19 = vld [vmem:[%s2854_s1 + $0x1b0] sm:$0xff]  ;;  %v346_v21 = vld [vmem:[%s2854_s1 + $0x1e8] sm:$0xff]  ;;  %v344_v22 = vld [vmem:[%s2854_s1 + $0x1d8] sm:$0xff]  ;;  %v1808_v24 = vpack.c.bf16 %v337_v16, %v333_v15 }
  0x4e   : > { %v348_v23 = vld [vmem:[%s2854_s1 + $0x1f8] sm:$0xff]  ;;  %v1840_v25 = vpack.c.bf16 %v339_v19, %v335_v17  ;;  %v1810_v26 = vpack.c.bf16 %v346_v21, %v342_v20  ;;  %v341_v27 = vld [vmem:[%s2854_s1 + $0x1c0] sm:$0xff]  ;;  %v343_v30 = vld [vmem:[%s2854_s1 + $0x1d0] sm:$0xff] }
  0x4f   : > { %1801 = vmatpush1.bf16.msra.mxu0 %v1800_v63  ;;  %v345_v28 = vld [vmem:[%s2854_s1 + $0x1e0] sm:$0xff]  ;;  %v1842_v29 = vpack.c.bf16 %v348_v23, %v344_v22  ;;  %v347_v31 = vld [vmem:[%s2854_s1 + $0x1f0] sm:$0xff]  ;;  %v912_v33 = vld [vmem:[%s2855_s2 + $0x88] sm:$0xff] }
  0x50   : > { %1833 = vmatpush1.bf16.msra.mxu1 %v1832_v1  ;;  %1803 = vmatprep.subr.bf16.mxu0 %v1802_v2  ;;  %v911_v32 = vld [vmem:[%s2855_s2 + $0x80] sm:$0xff]  ;;  %v944_v35 = vld [vmem:[%s2855_s2 + $0x188] sm:$0xff]  ;;  %v1812_v36 = vpack.c.bf16 %v345_v28, %v341_v27  ;;  %v1844_v37 = vpack.c.bf16 %v347_v31, %v343_v30  ;;  %v913_v44 = vld [vmem:[%s2855_s2 + $0x90] sm:$0xff] }
  0x51   : > { %1835 = vmatprep.subr.bf16.mxu1 %v1834_v6  ;;  %v943_v34 = vld [vmem:[%s2855_s2 + $0x180] sm:$0xff]  ;;  %v1846_v38 = vpack.c.bf16 %v912_v33, %v911_v32  ;;  %v896_v41 = vld [vmem:[%s2855_s2 + $0x8] sm:$0xff]  ;;  %v914_v45 = vld [vmem:[%s2855_s2 + $0x98] sm:$0xff] }
  0x52   : > { %v1878_v39 = vpack.c.bf16 %v944_v35, %v943_v34  ;;  %v895_v40 = vld [vmem:[%s2855_s2] sm:$0xff]  ;;  %v928_v43 = vld [vmem:[%s2855_s2 + $0x108] sm:$0xff]  ;;  %v945_v47 = vld [vmem:[%s2855_s2 + $0x190] sm:$0xff]  ;;  %v1850_v51 = vpack.c.bf16 %v914_v45, %v913_v44 }
  0x53   : > { %1805 = vmatpush1.bf16.msra.mxu0 %v1804_v12  ;;  %v927_v42 = vld [vmem:[%s2855_s2 + $0x100] sm:$0xff]  ;;  %v946_v48 = vld [vmem:[%s2855_s2 + $0x198] sm:$0xff]  ;;  %v1848_v49 = vpack.c.bf16 %v896_v41, %v895_v40  ;;  %v897_v52 = vld [vmem:[%s2855_s2 + $0x10] sm:$0xff] }
  0x54   : > { %1837 = vmatpush1.bf16.msra.mxu1 %v1836_v13  ;;  %1807 = vmatprep.subr.bf16.mxu0 %v1806_v14  ;;  %v269_v46 = vld [vmem:[%s2244_s28] sm:$0xff]  ;;  %v1880_v50 = vpack.c.bf16 %v928_v43, %v927_v42  ;;  %v898_v53 = vld [vmem:[%s2855_s2 + $0x18] sm:$0xff]  ;;  %v929_v54 = vld [vmem:[%s2855_s2 + $0x110] sm:$0xff]  ;;  %v1882_v55 = vpack.c.bf16 %v946_v48, %v945_v47 }
  0x55   : > { %1839 = vmatprep.subr.bf16.mxu1 %v1838_v18  ;;  %v930_v56 = vld [vmem:[%s2855_s2 + $0x118] sm:$0xff]  ;;  %v915_v57 = vld [vmem:[%s2855_s2 + $0xa0] sm:$0xff]  ;;  %v916_v58 = vld [vmem:[%s2855_s2 + $0xa8] sm:$0xff]  ;;  %v1852_v62 = vpack.c.bf16 %v898_v53, %v897_v52 }
  0x56   : > { %v270_v59 = vld [vmem:[%s2244_s28 + $0x8] sm:$0xff]  ;;  %v947_v60 = vld [vmem:[%s2855_s2 + $0x1a0] sm:$0xff]  ;;  %v1884_v63 = vpack.c.bf16 %v930_v56, %v929_v54  ;;  %v1854_v1 = vpack.c.bf16 %v916_v58, %v915_v57  ;;  %v917_v7 = vld [vmem:[%s2855_s2 + $0xb0] sm:$0xff] }
  0x57   : > { %1809 = vmatpush1.bf16.msra.mxu0 %v1808_v24  ;;  %v948_v61 = vld [vmem:[%s2855_s2 + $0x1a8] sm:$0xff]  ;;  %v899_v2 = vld [vmem:[%s2855_s2 + $0x20] sm:$0xff]  ;;  %v918_v8 = vld [vmem:[%s2855_s2 + $0xb8] sm:$0xff] }
  0x58   : > { %1841 = vmatpush1.bf16.msra.mxu1 %v1840_v25  ;;  %1811 = vmatprep.subr.bf16.mxu0 %v1810_v26  ;;  %v900_v3 = vld [vmem:[%s2855_s2 + $0x28] sm:$0xff]  ;;  %v931_v4 = vld [vmem:[%s2855_s2 + $0x120] sm:$0xff]  ;;  %v1886_v5 = vpack.c.bf16 %v948_v61, %v947_v60  ;;  %v271_v9 = vld [vmem:[%s2244_s28 + $0x10] sm:$0xff]  ;;  %v1858_v14 = vpack.c.bf16 %v918_v8, %v917_v7 }
  0x59   : > { %1843 = vmatprep.subr.bf16.mxu1 %v1842_v29  ;;  %v932_v6 = vld [vmem:[%s2855_s2 + $0x128] sm:$0xff]  ;;  %v949_v10 = vld [vmem:[%s2855_s2 + $0x1b0] sm:$0xff]  ;;  %v950_v11 = vld [vmem:[%s2855_s2 + $0x1b8] sm:$0xff]  ;;  %v1856_v12 = vpack.c.bf16 %v900_v3, %v899_v2 }
  0x5a   : > { %v1888_v13 = vpack.c.bf16 %v932_v6, %v931_v4  ;;  %v901_v15 = vld [vmem:[%s2855_s2 + $0x30] sm:$0xff]  ;;  %v902_v16 = vld [vmem:[%s2855_s2 + $0x38] sm:$0xff]  ;;  %v1890_v18 = vpack.c.bf16 %v950_v11, %v949_v10  ;;  %v919_v20 = vld [vmem:[%s2855_s2 + $0xc0] sm:$0xff] }
  0x5b   : > { %1813 = vmatpush1.bf16.msra.mxu0 %v1812_v36  ;;  %v933_v17 = vld [vmem:[%s2855_s2 + $0x130] sm:$0xff]  ;;  %v934_v19 = vld [vmem:[%s2855_s2 + $0x138] sm:$0xff]  ;;  %v920_v21 = vld [vmem:[%s2855_s2 + $0xc8] sm:$0xff]  ;;  %v1860_v25 = vpack.c.bf16 %v902_v16, %v901_v15 }
  0x5c   : > { %1845 = vmatpush1.bf16.msra.mxu1 %v1844_v37  ;;  %1847 = vmatprep.subr.bf16.mxu0 %v1846_v38  ;;  %v272_v22 = vld [vmem:[%s2244_s28 + $0x18] sm:$0xff]  ;;  %v951_v23 = vld [vmem:[%s2855_s2 + $0x1c0] sm:$0xff]  ;;  %v952_v24 = vld [vmem:[%s2855_s2 + $0x1c8] sm:$0xff]  ;;  %v1892_v26 = vpack.c.bf16 %v934_v19, %v933_v17  ;;  %v1862_v27 = vpack.c.bf16 %v920_v21, %v919_v20 }
  0x5d   : > { %1879 = vmatprep.subr.bf16.mxu1 %v1878_v39  ;;  %v903_v28 = vld [vmem:[%s2855_s2 + $0x40] sm:$0xff]  ;;  %v904_v29 = vld [vmem:[%s2855_s2 + $0x48] sm:$0xff]  ;;  %v1894_v31 = vpack.c.bf16 %v952_v24, %v951_v23  ;;  %v921_v33 = vld [vmem:[%s2855_s2 + $0xd0] sm:$0xff] }
  0x5e   : > { %414 = vmatmul.mubr.f32.vlgmr.msra.gmra.mrb[0].mxu0 %v269_v46  ;;  %v935_v30 = vld [vmem:[%s2855_s2 + $0x140] sm:$0xff]  ;;  %v936_v32 = vld [vmem:[%s2855_s2 + $0x148] sm:$0xff]  ;;  %v922_v34 = vld [vmem:[%s2855_s2 + $0xd8] sm:$0xff]  ;;  %v1864_v38 = vpack.c.bf16 %v904_v29, %v903_v28 }
  0x5f   : > { %575 = vmatmul.mubr.f32.vlgmr.msra.gmra.mrb[0].mxu1 %v269_v46  ;;  %419 = vmatprep.mubr.f32.mxu0 %v2100_v0  ;;  %v273_v35 = vld [vmem:[%s2244_s28 + $0x20] sm:$0xff]  ;;  %v953_v36 = vld [vmem:[%s2855_s2 + $0x1d0] sm:$0xff]  ;;  %v954_v37 = vld [vmem:[%s2855_s2 + $0x1d8] sm:$0xff]  ;;  %v1896_v39 = vpack.c.bf16 %v936_v32, %v935_v30  ;;  %v1866_v40 = vpack.c.bf16 %v922_v34, %v921_v33 }
  0x60   : > { %580 = vmatprep.mubr.f32.mxu1 %v2100_v0  ;;  %1849 = vmatpush3.bf16.msra.mxu0 %v1848_v49  ;;  %v905_v41 = vld [vmem:[%s2855_s2 + $0x50] sm:$0xff]  ;;  %v906_v42 = vld [vmem:[%s2855_s2 + $0x58] sm:$0xff]  ;;  %v1898_v44 = vpack.c.bf16 %v954_v37, %v953_v36  ;;  %v923_v46 = vld [vmem:[%s2855_s2 + $0xe0] sm:$0xff] }
  0x61   : > { %1881 = vmatpush3.bf16.msra.mxu1 %v1880_v50  ;;  %1851 = vmatprep.subr.bf16.mxu0 %v1850_v51  ;;  %v937_v43 = vld [vmem:[%s2855_s2 + $0x150] sm:$0xff]  ;;  %v938_v45 = vld [vmem:[%s2855_s2 + $0x158] sm:$0xff]  ;;  %v924_v47 = vld [vmem:[%s2855_s2 + $0xe8] sm:$0xff]  ;;  %v1868_v51 = vpack.c.bf16 %v906_v42, %v905_v41 }
  0x62   : > { %420 = vmatmul.mubr.f32.gmra.mrb[2].mxu0 %v270_v59  ;;  %1883 = vmatprep.subr.bf16.mxu1 %v1882_v55  ;;  %v274_v48 = vld [vmem:[%s2244_s28 + $0x28] sm:$0xff]  ;;  %v955_v49 = vld [vmem:[%s2855_s2 + $0x1e0] sm:$0xff]  ;;  %v1900_v52 = vpack.c.bf16 %v938_v45, %v937_v43  ;;  %v1870_v53 = vpack.c.bf16 %v924_v47, %v923_v46  ;;  %v926_v60 = vld [vmem:[%s2855_s2 + $0xf8] sm:$0xff] }
  0x63   : > { %581 = vmatmul.mubr.f32.gmra.mrb[2].mxu1 %v270_v59  ;;  %425 = vmatprep.mubr.f32.mxu0 %v2100_v0  ;;  %v956_v50 = vld [vmem:[%s2855_s2 + $0x1e8] sm:$0xff]  ;;  %v907_v54 = vld [vmem:[%s2855_s2 + $0x60] sm:$0xff]  ;;  %v925_v59 = vld [vmem:[%s2855_s2 + $0xf0] sm:$0xff] }
  0x64   : > { %586 = vmatprep.mubr.f32.mxu1 %v2100_v0  ;;  %1853 = vmatpush3.bf16.msra.mxu0 %v1852_v62  ;;  %v908_v55 = vld [vmem:[%s2855_s2 + $0x68] sm:$0xff]  ;;  %v939_v56 = vld [vmem:[%s2855_s2 + $0x160] sm:$0xff]  ;;  %v1902_v57 = vpack.c.bf16 %v956_v50, %v955_v49  ;;  %v275_v61 = vld [vmem:[%s2244_s28 + $0x30] sm:$0xff]  ;;  %v1874_v3 = vpack.c.bf16 %v926_v60, %v925_v59 }
  0x65   : > { %1885 = vmatpush3.bf16.msra.mxu1 %v1884_v63  ;;  %1855 = vmatprep.subr.bf16.mxu0 %v1854_v1  ;;  %v940_v58 = vld [vmem:[%s2855_s2 + $0x168] sm:$0xff]  ;;  %v957_v62 = vld [vmem:[%s2855_s2 + $0x1f0] sm:$0xff]  ;;  %v958_v63 = vld [vmem:[%s2855_s2 + $0x1f8] sm:$0xff]  ;;  %v1872_v1 = vpack.c.bf16 %v908_v55, %v907_v54 }
  0x66   : > { %426 = vmatmul.mubr.f32.gmra.mrb[4].mxu0 %v271_v9  ;;  %1887 = vmatprep.subr.bf16.mxu1 %v1886_v5  ;;  %v1904_v2 = vpack.c.bf16 %v940_v58, %v939_v56  ;;  %v909_v4 = vld [vmem:[%s2855_s2 + $0x70] sm:$0xff]  ;;  %v910_v5 = vld [vmem:[%s2855_s2 + $0x78] sm:$0xff]  ;;  %v1906_v6 = vpack.c.bf16 %v958_v63, %v957_v62  ;;  %v281_v16 = vld [vmem:[%s2244_s28 + $0x60] sm:$0xff] }
  0x67   : > { %587 = vmatmul.mubr.f32.gmra.mrb[4].mxu1 %v271_v9  ;;  %431 = vmatprep.mubr.f32.mxu0 %v2100_v0  ;;  %v941_v7 = vld [vmem:[%s2855_s2 + $0x170] sm:$0xff]  ;;  %v942_v8 = vld [vmem:[%s2855_s2 + $0x178] sm:$0xff]  ;;  %v1876_v10 = vpack.c.bf16 %v910_v5, %v909_v4  ;;  %v282_v17 = vld [vmem:[%s2244_s28 + $0x68] sm:$0xff] }
  0x68   : > { %592 = vmatprep.mubr.f32.mxu1 %v2100_v0  ;;  %1857 = vmatpush3.bf16.msra.mxu0 %v1856_v12  ;;  %v276_v9 = vld [vmem:[%s2244_s28 + $0x38] sm:$0xff]  ;;  %v1908_v11 = vpack.c.bf16 %v942_v8, %v941_v7  ;;  %v277_v12 = vld [vmem:[%s2244_s28 + $0x40] sm:$0xff] }
  0x69   : > { %1889 = vmatpush3.bf16.msra.mxu1 %v1888_v13  ;;  %1859 = vmatprep.subr.bf16.mxu0 %v1858_v14  ;;  %v278_v13 = vld [vmem:[%s2244_s28 + $0x48] sm:$0xff]  ;;  %v279_v14 = vld [vmem:[%s2244_s28 + $0x50] sm:$0xff]  ;;  %v280_v15 = vld [vmem:[%s2244_s28 + $0x58] sm:$0xff] }
  0x6a   : > { %432 = vmatmul.mubr.f32.gmra.mrb[6].mxu0 %v272_v22  ;;  %1891 = vmatprep.subr.bf16.mxu1 %v1890_v18  ;;  %v283_v18 = vld [vmem:[%s2244_s28 + $0x70] sm:$0xff]  ;;  %v284_v19 = vld [vmem:[%s2244_s28 + $0x78] sm:$0xff]  ;;  %s1545_s28 = sshll.u32 %s2157_s22, 4 }
  0x6b   : > { %593 = vmatmul.mubr.f32.gmra.mrb[6].mxu1 %v272_v22  ;;  %437 = vmatprep.mubr.f32.mxu0 %v2100_v0  ;;  %p264_p6 = scmp.lt.s32.totalorder %s1545_s28, 31 }
  0x6c   : > { %598 = vmatprep.mubr.f32.mxu1 %v2100_v0  ;;  %1861 = vmatpush3.bf16.msra.mxu0 %v1860_v25 }
  0x6d   : > { %1893 = vmatpush3.bf16.msra.mxu1 %v1892_v26  ;;  %1863 = vmatprep.subr.bf16.mxu0 %v1862_v27  ;;  %s2873_s28 = smov (!%p264_p6, %s1545_s28), 31 }
  0x6e   : > { %438 = vmatmul.mubr.f32.gmra.mrb[8].mxu0 %v273_v35  ;;  %1895 = vmatprep.subr.bf16.mxu1 %v1894_v31  ;;  %s1546_s29 = sshll.u32 %s2873_s28, 3 }
  0x6f   : > { %599 = vmatmul.mubr.f32.gmra.mrb[8].mxu1 %v273_v35  ;;  %443 = vmatprep.mubr.f32.mxu0 %v2100_v0  ;;  %s2721_s11 = scalar_lea.vmem %s2858_s5, %s1546_s29 }
  0x70   : > { %604 = vmatprep.mubr.f32.mxu1 %v2100_v0  ;;  %1865 = vmatpush3.bf16.msra.mxu0 %v1864_v38 }
  0x71   : > { %1897 = vmatpush3.bf16.msra.mxu1 %v1896_v39  ;;  %1867 = vmatprep.subr.bf16.mxu0 %v1866_v40 }
  0x72   : > { %444 = vmatmul.mubr.f32.gmra.mrb[10].mxu0 %v274_v48  ;;  %1899 = vmatprep.subr.bf16.mxu1 %v1898_v44 }
  0x73   : > { %605 = vmatmul.mubr.f32.gmra.mrb[10].mxu1 %v274_v48  ;;  %449 = vmatprep.mubr.f32.mxu0 %v2100_v0 }
  0x74   : > { %610 = vmatprep.mubr.f32.mxu1 %v2100_v0  ;;  %1869 = vmatpush3.bf16.msra.mxu0 %v1868_v51 }
  0x75   : > { %1901 = vmatpush3.bf16.msra.mxu1 %v1900_v52  ;;  %1871 = vmatprep.subr.bf16.mxu0 %v1870_v53 }
  0x76   : > { %450 = vmatmul.mubr.f32.gmra.mrb[12].mxu0 %v275_v61  ;;  %1903 = vmatprep.subr.bf16.mxu1 %v1902_v57 }
  0x77   : > { %611 = vmatmul.mubr.f32.gmra.mrb[12].mxu1 %v275_v61  ;;  %455 = vmatprep.mubr.f32.mxu0 %v2100_v0 }
  0x78   : > { %616 = vmatprep.mubr.f32.mxu1 %v2100_v0  ;;  %1873 = vmatpush3.bf16.msra.mxu0 %v1872_v1 }
  0x79   : > { %1905 = vmatpush3.bf16.msra.mxu1 %v1904_v2  ;;  %1875 = vmatprep.subr.bf16.mxu0 %v1874_v3 }
  0x7a   : > { %456 = vmatmul.mubr.f32.gmra.mrb[14].mxu0 %v276_v9  ;;  %1907 = vmatprep.subr.bf16.mxu1 %v1906_v6 }
  0x7b   : > { %617 = vmatmul.mubr.f32.gmra.mrb[14].mxu1 %v276_v9  ;;  %461 = vmatprep.mubr.f32.mxu0 %v2100_v0 }
  0x7c   : > { %622 = vmatprep.mubr.f32.mxu1 %v2100_v0  ;;  %1877 = vmatpush3.bf16.msra.mxu0 %v1876_v10 }
  0x7d   : > { %1909 = vmatpush3.bf16.msra.mxu1 %v1908_v11 }
  0x7e   : > { %462 = vmatmul.mubr.f32.gmra.mrb[16].mxu0 %v277_v12 }
  0x7f   : > { %623 = vmatmul.mubr.f32.gmra.mrb[16].mxu1 %v277_v12  ;;  %467 = vmatprep.mubr.f32.mxu0 %v2100_v0 }
  0x80   : > { %628 = vmatprep.mubr.f32.mxu1 %v2100_v0 }
  0x82   : > { %468 = vmatmul.mubr.f32.gmra.mrb[18].mxu0 %v278_v13 }
  0x83   : > { %629 = vmatmul.mubr.f32.gmra.mrb[18].mxu1 %v278_v13  ;;  %473 = vmatprep.mubr.f32.mxu0 %v2100_v0 }
  0x84   : > { %634 = vmatprep.mubr.f32.mxu1 %v2100_v0 }
  0x86   : > { %474 = vmatmul.mubr.f32.gmra.mrb[20].mxu0 %v279_v14 }
  0x87   : > { %635 = vmatmul.mubr.f32.gmra.mrb[20].mxu1 %v279_v14  ;;  %479 = vmatprep.mubr.f32.mxu0 %v2100_v0 }
  0x88   : > { %640 = vmatprep.mubr.f32.mxu1 %v2100_v0 }
  0x8a   : > { %480 = vmatmul.mubr.f32.gmra.mrb[22].mxu0 %v280_v15 }
  0x8b   : > { %641 = vmatmul.mubr.f32.gmra.mrb[22].mxu1 %v280_v15  ;;  %485 = vmatprep.mubr.f32.mxu0 %v2100_v0 }
  0x8c   : > { %646 = vmatprep.mubr.f32.mxu1 %v2100_v0 }
  0x8e   : > { %486 = vmatmul.mubr.f32.gmra.mrb[24].mxu0 %v281_v16 }
  0x8f   : > { %647 = vmatmul.mubr.f32.gmra.mrb[24].mxu1 %v281_v16  ;;  %491 = vmatprep.mubr.f32.mxu0 %v2100_v0 }
  0x90   : > { %652 = vmatprep.mubr.f32.mxu1 %v2100_v0 }
  0x92   : > { %492 = vmatmul.mubr.f32.gmra.mrb[26].mxu0 %v282_v17 }
  0x93   : > { %653 = vmatmul.mubr.f32.gmra.mrb[26].mxu1 %v282_v17  ;;  %497 = vmatprep.mubr.f32.mxu0 %v2100_v0 }
  0x94   : > { %658 = vmatprep.mubr.f32.mxu1 %v2100_v0 }
  0x96   : > { %498 = vmatmul.mubr.f32.gmra.mrb[28].mxu0 %v283_v18 }
  0x97   : > { %659 = vmatmul.mubr.f32.gmra.mrb[28].mxu1 %v283_v18  ;;  %503 = vmatprep.mubr.f32.mxu0 %v2100_v0 }
  0x98   : > { %664 = vmatprep.mubr.f32.mxu1 %v2100_v0 }
  0x9a   : > { %504 = vmatmul.mubr.f32.gmra.mrb[30].mxu0 %v284_v19 }
  0x9b   : > { %665 = vmatmul.mubr.f32.gmra.mrb[30].mxu1 %v284_v19 }
 0x131   : > { %v415_v20 = vpop.f32.mrb[0].mxu0 }
 0x132   : > { %v576_v21 = vpop.f32.mrb[0].mxu1  ;;  %v417_v22 = vpop.f32.mrb[1].mxu0 }
 0x133   : > { %v1588_v23 = vpack.c.bf16 %v417_v22, %v415_v20  ;;  %v578_v24 = vpop.f32.mrb[1].mxu1  ;;  %1023 = vmatprep.mubr.f32.mxu0 %v417_v22 }
 0x134   : > { %v1589_v25 = vpack.c.bf16 %v578_v24, %v576_v21  ;;  %1168 = vmatprep.mubr.f32.mxu1 %v578_v24  ;;  %1024 = vmatmul.mubr.f32.vlgmr.msra.gmra.mrb[32].mxu0 %v415_v20 }
 0x135   : > { %863 = vst [vmem:[%s2683_s7] sm:$0xff] %v1588_v23  ;;  %1169 = vmatmul.mubr.f32.vlgmr.msra.gmra.mrb[32].mxu1 %v576_v21  ;;  %v421_v0 = vpop.f32.mrb[2].mxu0 }
 0x136   : > { %864 = vst [vmem:[%s2683_s7 + $0x8] sm:$0xff] %v1589_v25  ;;  %v582_v26 = vpop.f32.mrb[2].mxu1  ;;  %v423_v27 = vpop.f32.mrb[3].mxu0 }
 0x137   : > { %v1590_v28 = vpack.c.bf16 %v423_v27, %v421_v0  ;;  %v584_v29 = vpop.f32.mrb[3].mxu1  ;;  %1028 = vmatprep.mubr.f32.mxu0 %v423_v27 }
 0x138   : > { %v1591_v30 = vpack.c.bf16 %v584_v29, %v582_v26  ;;  %1173 = vmatprep.mubr.f32.mxu1 %v584_v29  ;;  %1029 = vmatmul.mubr.f32.gmra.mrb[34].mxu0 %v421_v0 }
 0x139   : > { %865 = vst [vmem:[%s2683_s7 + $0x10] sm:$0xff] %v1590_v28  ;;  %1174 = vmatmul.mubr.f32.gmra.mrb[34].mxu1 %v582_v26  ;;  %v427_v31 = vpop.f32.mrb[4].mxu0 }
 0x13a   : > { %866 = vst [vmem:[%s2683_s7 + $0x18] sm:$0xff] %v1591_v30  ;;  %v588_v32 = vpop.f32.mrb[4].mxu1  ;;  %v429_v33 = vpop.f32.mrb[5].mxu0 }
 0x13b   : > { %v1592_v34 = vpack.c.bf16 %v429_v33, %v427_v31  ;;  %v590_v35 = vpop.f32.mrb[5].mxu1  ;;  %1033 = vmatprep.mubr.f32.mxu0 %v429_v33 }
 0x13c   : > { %v1593_v36 = vpack.c.bf16 %v590_v35, %v588_v32  ;;  %1178 = vmatprep.mubr.f32.mxu1 %v590_v35  ;;  %1034 = vmatmul.mubr.f32.gmra.mrb[36].mxu0 %v427_v31 }
 0x13d   : > { %867 = vst [vmem:[%s2683_s7 + $0x20] sm:$0xff] %v1592_v34  ;;  %1179 = vmatmul.mubr.f32.gmra.mrb[36].mxu1 %v588_v32  ;;  %v433_v37 = vpop.f32.mrb[6].mxu0 }
 0x13e   : > { %868 = vst [vmem:[%s2683_s7 + $0x28] sm:$0xff] %v1593_v36  ;;  %v594_v38 = vpop.f32.mrb[6].mxu1  ;;  %v435_v39 = vpop.f32.mrb[7].mxu0 }
 0x13f   : > { %v1594_v40 = vpack.c.bf16 %v435_v39, %v433_v37  ;;  %v596_v41 = vpop.f32.mrb[7].mxu1  ;;  %1038 = vmatprep.mubr.f32.mxu0 %v435_v39 }
 0x140   : > { %v1595_v42 = vpack.c.bf16 %v596_v41, %v594_v38  ;;  %1183 = vmatprep.mubr.f32.mxu1 %v596_v41  ;;  %1039 = vmatmul.mubr.f32.gmra.mrb[38].mxu0 %v433_v37 }
 0x141   : > { %869 = vst [vmem:[%s2683_s7 + $0x30] sm:$0xff] %v1594_v40  ;;  %1184 = vmatmul.mubr.f32.gmra.mrb[38].mxu1 %v594_v38  ;;  %v439_v43 = vpop.f32.mrb[8].mxu0 }
 0x142   : > { %870 = vst [vmem:[%s2683_s7 + $0x38] sm:$0xff] %v1595_v42  ;;  %v600_v44 = vpop.f32.mrb[8].mxu1  ;;  %v441_v45 = vpop.f32.mrb[9].mxu0 }
 0x143   : > { %v1596_v46 = vpack.c.bf16 %v441_v45, %v439_v43  ;;  %v602_v47 = vpop.f32.mrb[9].mxu1  ;;  %1043 = vmatprep.mubr.f32.mxu0 %v441_v45 }
 0x144   : > { %v1597_v48 = vpack.c.bf16 %v602_v47, %v600_v44  ;;  %1188 = vmatprep.mubr.f32.mxu1 %v602_v47  ;;  %1044 = vmatmul.mubr.f32.gmra.mrb[40].mxu0 %v439_v43 }
 0x145   : > { %871 = vst [vmem:[%s2683_s7 + $0x40] sm:$0xff] %v1596_v46  ;;  %1189 = vmatmul.mubr.f32.gmra.mrb[40].mxu1 %v600_v44  ;;  %v445_v49 = vpop.f32.mrb[10].mxu0 }
 0x146   : > { %872 = vst [vmem:[%s2683_s7 + $0x48] sm:$0xff] %v1597_v48  ;;  %v606_v50 = vpop.f32.mrb[10].mxu1  ;;  %v447_v51 = vpop.f32.mrb[11].mxu0 }
 0x147   : > { %v1598_v52 = vpack.c.bf16 %v447_v51, %v445_v49  ;;  %v608_v53 = vpop.f32.mrb[11].mxu1  ;;  %1048 = vmatprep.mubr.f32.mxu0 %v447_v51 }
 0x148   : > { %v1599_v54 = vpack.c.bf16 %v608_v53, %v606_v50  ;;  %1193 = vmatprep.mubr.f32.mxu1 %v608_v53  ;;  %1049 = vmatmul.mubr.f32.gmra.mrb[42].mxu0 %v445_v49 }
 0x149   : > { %873 = vst [vmem:[%s2683_s7 + $0x50] sm:$0xff] %v1598_v52  ;;  %1194 = vmatmul.mubr.f32.gmra.mrb[42].mxu1 %v606_v50  ;;  %v451_v55 = vpop.f32.mrb[12].mxu0 }
 0x14a   : > { %874 = vst [vmem:[%s2683_s7 + $0x58] sm:$0xff] %v1599_v54  ;;  %v612_v56 = vpop.f32.mrb[12].mxu1  ;;  %v453_v57 = vpop.f32.mrb[13].mxu0 }
 0x14b   : > { %v1600_v58 = vpack.c.bf16 %v453_v57, %v451_v55  ;;  %v614_v59 = vpop.f32.mrb[13].mxu1  ;;  %1053 = vmatprep.mubr.f32.mxu0 %v453_v57 }
 0x14c   : > { %v1601_v60 = vpack.c.bf16 %v614_v59, %v612_v56  ;;  %1198 = vmatprep.mubr.f32.mxu1 %v614_v59  ;;  %1054 = vmatmul.mubr.f32.gmra.mrb[44].mxu0 %v451_v55 }
 0x14d   : > { %875 = vst [vmem:[%s2683_s7 + $0x60] sm:$0xff] %v1600_v58  ;;  %1199 = vmatmul.mubr.f32.gmra.mrb[44].mxu1 %v612_v56  ;;  %v457_v61 = vpop.f32.mrb[14].mxu0 }
 0x14e   : > { %876 = vst [vmem:[%s2683_s7 + $0x68] sm:$0xff] %v1601_v60  ;;  %v618_v62 = vpop.f32.mrb[14].mxu1  ;;  %v459_v63 = vpop.f32.mrb[15].mxu0 }
 0x14f   : > { %v1602_v1 = vpack.c.bf16 %v459_v63, %v457_v61  ;;  %v620_v2 = vpop.f32.mrb[15].mxu1  ;;  %1058 = vmatprep.mubr.f32.mxu0 %v459_v63 }
 0x150   : > { %v1603_v3 = vpack.c.bf16 %v620_v2, %v618_v62  ;;  %1203 = vmatprep.mubr.f32.mxu1 %v620_v2  ;;  %1059 = vmatmul.mubr.f32.gmra.mrb[46].mxu0 %v457_v61 }
 0x151   : > { %877 = vst [vmem:[%s2683_s7 + $0x70] sm:$0xff] %v1602_v1  ;;  %1204 = vmatmul.mubr.f32.gmra.mrb[46].mxu1 %v618_v62  ;;  %v463_v4 = vpop.f32.mrb[16].mxu0 }
 0x152   : > { %878 = vst [vmem:[%s2683_s7 + $0x78] sm:$0xff] %v1603_v3  ;;  %v624_v5 = vpop.f32.mrb[16].mxu1  ;;  %v465_v6 = vpop.f32.mrb[17].mxu0 }
 0x153   : > { %v1604_v7 = vpack.c.bf16 %v465_v6, %v463_v4  ;;  %v626_v8 = vpop.f32.mrb[17].mxu1  ;;  %1063 = vmatprep.mubr.f32.mxu0 %v465_v6 }
 0x154   : > { %v1605_v9 = vpack.c.bf16 %v626_v8, %v624_v5  ;;  %1208 = vmatprep.mubr.f32.mxu1 %v626_v8  ;;  %1064 = vmatmul.mubr.f32.gmra.mrb[48].mxu0 %v463_v4 }
 0x155   : > { %879 = vst [vmem:[%s2683_s7 + $0x80] sm:$0xff] %v1604_v7  ;;  %1209 = vmatmul.mubr.f32.gmra.mrb[48].mxu1 %v624_v5  ;;  %v469_v10 = vpop.f32.mrb[18].mxu0 }
 0x156   : > { %880 = vst [vmem:[%s2683_s7 + $0x88] sm:$0xff] %v1605_v9  ;;  %v630_v11 = vpop.f32.mrb[18].mxu1  ;;  %v471_v12 = vpop.f32.mrb[19].mxu0 }
 0x157   : > { %v1606_v13 = vpack.c.bf16 %v471_v12, %v469_v10  ;;  %v632_v14 = vpop.f32.mrb[19].mxu1  ;;  %1068 = vmatprep.mubr.f32.mxu0 %v471_v12 }
 0x158   : > { %v1607_v15 = vpack.c.bf16 %v632_v14, %v630_v11  ;;  %1213 = vmatprep.mubr.f32.mxu1 %v632_v14  ;;  %1069 = vmatmul.mubr.f32.gmra.mrb[50].mxu0 %v469_v10 }
 0x159   : > { %881 = vst [vmem:[%s2683_s7 + $0x90] sm:$0xff] %v1606_v13  ;;  %1214 = vmatmul.mubr.f32.gmra.mrb[50].mxu1 %v630_v11  ;;  %v475_v16 = vpop.f32.mrb[20].mxu0 }
 0x15a   : > { %882 = vst [vmem:[%s2683_s7 + $0x98] sm:$0xff] %v1607_v15  ;;  %v636_v17 = vpop.f32.mrb[20].mxu1  ;;  %v477_v18 = vpop.f32.mrb[21].mxu0 }
 0x15b   : > { %v1608_v19 = vpack.c.bf16 %v477_v18, %v475_v16  ;;  %v638_v20 = vpop.f32.mrb[21].mxu1  ;;  %1073 = vmatprep.mubr.f32.mxu0 %v477_v18 }
 0x15c   : > { %v1609_v21 = vpack.c.bf16 %v638_v20, %v636_v17  ;;  %1218 = vmatprep.mubr.f32.mxu1 %v638_v20  ;;  %1074 = vmatmul.mubr.f32.gmra.mrb[52].mxu0 %v475_v16 }
 0x15d   : > { %883 = vst [vmem:[%s2683_s7 + $0xa0] sm:$0xff] %v1608_v19  ;;  %1219 = vmatmul.mubr.f32.gmra.mrb[52].mxu1 %v636_v17  ;;  %v481_v22 = vpop.f32.mrb[22].mxu0 }
 0x15e   : > { %884 = vst [vmem:[%s2683_s7 + $0xa8] sm:$0xff] %v1609_v21  ;;  %v642_v23 = vpop.f32.mrb[22].mxu1  ;;  %v483_v24 = vpop.f32.mrb[23].mxu0 }
 0x15f   : > { %v1610_v25 = vpack.c.bf16 %v483_v24, %v481_v22  ;;  %v644_v0 = vpop.f32.mrb[23].mxu1  ;;  %1078 = vmatprep.mubr.f32.mxu0 %v483_v24 }
 0x160   : > { %v1611_v26 = vpack.c.bf16 %v644_v0, %v642_v23  ;;  %1223 = vmatprep.mubr.f32.mxu1 %v644_v0  ;;  %1079 = vmatmul.mubr.f32.gmra.mrb[54].mxu0 %v481_v22 }
 0x161   : > { %885 = vst [vmem:[%s2683_s7 + $0xb0] sm:$0xff] %v1610_v25  ;;  %1224 = vmatmul.mubr.f32.gmra.mrb[54].mxu1 %v642_v23  ;;  %v487_v27 = vpop.f32.mrb[24].mxu0 }
 0x162   : > { %886 = vst [vmem:[%s2683_s7 + $0xb8] sm:$0xff] %v1611_v26  ;;  %v648_v28 = vpop.f32.mrb[24].mxu1  ;;  %v489_v29 = vpop.f32.mrb[25].mxu0 }
 0x163   : > { %v1612_v30 = vpack.c.bf16 %v489_v29, %v487_v27  ;;  %v650_v31 = vpop.f32.mrb[25].mxu1  ;;  %1083 = vmatprep.mubr.f32.mxu0 %v489_v29 }
 0x164   : > { %v1613_v32 = vpack.c.bf16 %v650_v31, %v648_v28  ;;  %1228 = vmatprep.mubr.f32.mxu1 %v650_v31  ;;  %1084 = vmatmul.mubr.f32.gmra.mrb[56].mxu0 %v487_v27 }
 0x165   : > { %887 = vst [vmem:[%s2683_s7 + $0xc0] sm:$0xff] %v1612_v30  ;;  %1229 = vmatmul.mubr.f32.gmra.mrb[56].mxu1 %v648_v28  ;;  %v493_v33 = vpop.f32.mrb[26].mxu0 }
 0x166   : > { %888 = vst [vmem:[%s2683_s7 + $0xc8] sm:$0xff] %v1613_v32  ;;  %v654_v34 = vpop.f32.mrb[26].mxu1  ;;  %v495_v35 = vpop.f32.mrb[27].mxu0 }
 0x167   : > { %v1614_v36 = vpack.c.bf16 %v495_v35, %v493_v33  ;;  %v656_v37 = vpop.f32.mrb[27].mxu1  ;;  %1088 = vmatprep.mubr.f32.mxu0 %v495_v35 }
 0x168   : > { %v1615_v38 = vpack.c.bf16 %v656_v37, %v654_v34  ;;  %1233 = vmatprep.mubr.f32.mxu1 %v656_v37  ;;  %1089 = vmatmul.mubr.f32.gmra.mrb[58].mxu0 %v493_v33 }
 0x169   : > { %889 = vst [vmem:[%s2683_s7 + $0xd0] sm:$0xff] %v1614_v36  ;;  %1234 = vmatmul.mubr.f32.gmra.mrb[58].mxu1 %v654_v34  ;;  %v499_v39 = vpop.f32.mrb[28].mxu0 }
 0x16a   : > { %890 = vst [vmem:[%s2683_s7 + $0xd8] sm:$0xff] %v1615_v38  ;;  %v660_v40 = vpop.f32.mrb[28].mxu1  ;;  %v501_v41 = vpop.f32.mrb[29].mxu0 }
 0x16b   : > { %v1616_v42 = vpack.c.bf16 %v501_v41, %v499_v39  ;;  %v662_v43 = vpop.f32.mrb[29].mxu1  ;;  %1093 = vmatprep.mubr.f32.mxu0 %v501_v41 }
 0x16c   : > { %v1617_v44 = vpack.c.bf16 %v662_v43, %v660_v40  ;;  %1238 = vmatprep.mubr.f32.mxu1 %v662_v43  ;;  %1094 = vmatmul.mubr.f32.gmra.mrb[60].mxu0 %v499_v39 }
 0x16d   : > { %891 = vst [vmem:[%s2683_s7 + $0xe0] sm:$0xff] %v1616_v42  ;;  %1239 = vmatmul.mubr.f32.gmra.mrb[60].mxu1 %v660_v40  ;;  %v505_v45 = vpop.f32.mrb[30].mxu0 }
 0x16e   : > { %892 = vst [vmem:[%s2683_s7 + $0xe8] sm:$0xff] %v1617_v44  ;;  %v666_v46 = vpop.f32.mrb[30].mxu1  ;;  %v507_v47 = vpop.f32.mrb[31].mxu0 }
 0x16f   : > { %v1618_v48 = vpack.c.bf16 %v507_v47, %v505_v45  ;;  %v668_v49 = vpop.f32.mrb[31].mxu1  ;;  %1098 = vmatprep.mubr.f32.mxu0 %v507_v47 }
 0x170   : > { %v1619_v50 = vpack.c.bf16 %v668_v49, %v666_v46  ;;  %1243 = vmatprep.mubr.f32.mxu1 %v668_v49  ;;  %1099 = vmatmul.mubr.f32.gmra.mrb[62].mxu0 %v505_v45 }
 0x171   : > { %893 = vst [vmem:[%s2683_s7 + $0xf0] sm:$0xff] %v1618_v48  ;;  %1244 = vmatmul.mubr.f32.gmra.mrb[62].mxu1 %v666_v46 }
 0x172   : > { %894 = vst [vmem:[%s2683_s7 + $0xf8] sm:$0xff] %v1619_v50  ;;  %s2001_s7 = sshll.u32 %s2102_s8, 4  ;;  %s2002_s7 = int_to_ptr.vmem [resolvable:$false] %s2001_s7 }
 0x173   : > { %s2003_s28 = scalar_lea.vmem %s2002_s7, 8192  ;;  %p2004_p10 = scmp.lt.s32.totalorder %s2778_s25, %s2002_s7 }
 0x174   : > { %p2005_p0 = scmp.lt.s32.totalorder %s2003_s28, %s1997_s16 }
 0x176   : > { %p2006_p2 = por %p2005_p0, %p2004_p10 }
 0x178   : > { %p2007_p4 = pnand %p2006_p2, %p2000_p8 }
 0x207   : > { %v1654_v51 = vpop.f32.mrb[32].mxu0 }
 0x208   : > { %v1734_v52 = vpop.f32.mrb[32].mxu1  ;;  %v1655_v53 = vpop.f32.mrb[33].mxu0 }
 0x209   : > { %v1656_v54 = vadd.f32 %v1655_v53, %v1654_v51  ;;  %v1735_v55 = vpop.f32.mrb[33].mxu1 }
 0x20a   : > { %v1736_v56 = vadd.f32 %v1735_v55, %v1734_v52 }
 0x20b   : > { %v1657_v57 = vpop.f32.mrb[34].mxu0 }
 0x20c   : > { %v1737_v58 = vpop.f32.mrb[34].mxu1  ;;  %v1658_v59 = vpop.f32.mrb[35].mxu0  ;;  %v1171_v60 = vadd.f32 %v1736_v56, %v1656_v54 }
 0x20d   : > { %v1659_v61 = vadd.f32 %v1658_v59, %v1657_v57  ;;  %v1738_v62 = vpop.f32.mrb[35].mxu1 }
 0x20e   : > { %v1739_v63 = vadd.f32 %v1738_v62, %v1737_v58  ;;  %1282 = vrot.lane.b32.xlu0 %v1171_v60, %s2101_s13  ;;  %1250 = vst.msk [vmem:[%s2721_s11] sm:$0xff] %vm1249_vm0, %v1171_v60 }
 0x20f   : > { %v1660_v1 = vpop.f32.mrb[36].mxu0 }
 0x210   : > { %v1176_v2 = vadd.f32 %v1739_v63, %v1659_v61  ;;  %v1740_v3 = vpop.f32.mrb[36].mxu1  ;;  %v1661_v4 = vpop.f32.mrb[37].mxu0 }
 0x211   : > { %v1662_v5 = vadd.f32 %v1661_v4, %v1660_v1  ;;  %v1741_v6 = vpop.f32.mrb[37].mxu1 }
 0x212   : > { %1251 = vst.msk [vmem:[%s2721_s11 + $0x8] sm:$0xff] %vm1249_vm0, %v1176_v2  ;;  %v1742_v7 = vadd.f32 %v1741_v6, %v1740_v3  ;;  %1284 = vrot.lane.b32.xlu0 %v1176_v2, %s2101_s13 }
 0x213   : > { %v1663_v8 = vpop.f32.mrb[38].mxu0 }
 0x214   : > { %v1743_v9 = vpop.f32.mrb[38].mxu1  ;;  %v1664_v10 = vpop.f32.mrb[39].mxu0  ;;  %v1181_v11 = vadd.f32 %v1742_v7, %v1662_v5 }
 0x215   : > { %v1665_v12 = vadd.f32 %v1664_v10, %v1663_v8  ;;  %v1744_v13 = vpop.f32.mrb[39].mxu1 }
 0x216   : > { %v1745_v14 = vadd.f32 %v1744_v13, %v1743_v9  ;;  %1286 = vrot.lane.b32.xlu1 %v1181_v11, %s2101_s13  ;;  %1252 = vst.msk [vmem:[%s2721_s11 + $0x10] sm:$0xff] %vm1249_vm0, %v1181_v11 }
 0x217   : > { %v1666_v15 = vpop.f32.mrb[40].mxu0 }
 0x218   : > { %v1186_v16 = vadd.f32 %v1745_v14, %v1665_v12  ;;  %v1746_v17 = vpop.f32.mrb[40].mxu1  ;;  %v1667_v18 = vpop.f32.mrb[41].mxu0 }
 0x219   : > { %v1668_v19 = vadd.f32 %v1667_v18, %v1666_v15  ;;  %v1747_v20 = vpop.f32.mrb[41].mxu1 }
 0x21a   : > { %1253 = vst.msk [vmem:[%s2721_s11 + $0x18] sm:$0xff] %vm1249_vm0, %v1186_v16  ;;  %v1748_v21 = vadd.f32 %v1747_v20, %v1746_v17  ;;  %1288 = vrot.lane.b32.xlu1 %v1186_v16, %s2101_s13 }
 0x21b   : > { %v1669_v22 = vpop.f32.mrb[42].mxu0 }
 0x21c   : > { %v1191_v23 = vadd.f32 %v1748_v21, %v1668_v19  ;;  %v1749_v24 = vpop.f32.mrb[42].mxu1  ;;  %v1670_v25 = vpop.f32.mrb[43].mxu0 }
 0x21d   : > { %v1671_v0 = vadd.f32 %v1670_v25, %v1669_v22  ;;  %v1750_v26 = vpop.f32.mrb[43].mxu1 }
 0x21e   : > { %1254 = vst.msk [vmem:[%s2721_s11 + $0x20] sm:$0xff] %vm1249_vm0, %v1191_v23  ;;  %v1751_v27 = vadd.f32 %v1750_v26, %v1749_v24  ;;  %1290 = vrot.lane.b32.xlu0 %v1191_v23, %s2101_s13 }
 0x21f   : > { %v1672_v28 = vpop.f32.mrb[44].mxu0 }
 0x220   : > { %v1196_v29 = vadd.f32 %v1751_v27, %v1671_v0  ;;  %v1752_v30 = vpop.f32.mrb[44].mxu1  ;;  %v1673_v31 = vpop.f32.mrb[45].mxu0 }
 0x221   : > { %v1674_v32 = vadd.f32 %v1673_v31, %v1672_v28  ;;  %v1753_v33 = vpop.f32.mrb[45].mxu1 }
 0x222   : > { %1255 = vst.msk [vmem:[%s2721_s11 + $0x28] sm:$0xff] %vm1249_vm0, %v1196_v29  ;;  %v1754_v34 = vadd.f32 %v1753_v33, %v1752_v30  ;;  %1292 = vrot.lane.b32.xlu1 %v1196_v29, %s2101_s13 }
 0x223   : > { %v1675_v35 = vpop.f32.mrb[46].mxu0 }
 0x224   : > { %v1201_v36 = vadd.f32 %v1754_v34, %v1674_v32  ;;  %v1755_v37 = vpop.f32.mrb[46].mxu1  ;;  %v1676_v38 = vpop.f32.mrb[47].mxu0 }
 0x225   : > { %v1677_v39 = vadd.f32 %v1676_v38, %v1675_v35  ;;  %v1756_v40 = vpop.f32.mrb[47].mxu1 }
 0x226   : > { %1256 = vst.msk [vmem:[%s2721_s11 + $0x30] sm:$0xff] %vm1249_vm0, %v1201_v36  ;;  %v1757_v41 = vadd.f32 %v1756_v40, %v1755_v37  ;;  %1294 = vrot.lane.b32.xlu0 %v1201_v36, %s2101_s13 }
 0x227   : > { %v1678_v42 = vpop.f32.mrb[48].mxu0 }
 0x228   : > { %v1206_v43 = vadd.f32 %v1757_v41, %v1677_v39  ;;  %v1758_v44 = vpop.f32.mrb[48].mxu1  ;;  %v1679_v45 = vpop.f32.mrb[49].mxu0 }
 0x229   : > { %v1680_v46 = vadd.f32 %v1679_v45, %v1678_v42  ;;  %v1759_v47 = vpop.f32.mrb[49].mxu1 }
 0x22a   : > { %1257 = vst.msk [vmem:[%s2721_s11 + $0x38] sm:$0xff] %vm1249_vm0, %v1206_v43  ;;  %v1760_v48 = vadd.f32 %v1759_v47, %v1758_v44  ;;  %1296 = vrot.lane.b32.xlu1 %v1206_v43, %s2101_s13 }
 0x22b   : > { %v1681_v49 = vpop.f32.mrb[50].mxu0 }
 0x22c   : > { %v1211_v50 = vadd.f32 %v1760_v48, %v1680_v46  ;;  %v1761_v51 = vpop.f32.mrb[50].mxu1  ;;  %v1682_v52 = vpop.f32.mrb[51].mxu0 }
 0x22d   : > { %v1683_v53 = vadd.f32 %v1682_v52, %v1681_v49  ;;  %v1762_v54 = vpop.f32.mrb[51].mxu1 }
 0x22e   : > { %1258 = vst.msk [vmem:[%s2721_s11 + $0x40] sm:$0xff] %vm1249_vm0, %v1211_v50  ;;  %v1763_v55 = vadd.f32 %v1762_v54, %v1761_v51  ;;  %1298 = vrot.lane.b32.xlu0 %v1211_v50, %s2101_s13 }
 0x22f   : > { %v1684_v56 = vpop.f32.mrb[52].mxu0 }
 0x230   : > { %v1216_v57 = vadd.f32 %v1763_v55, %v1683_v53  ;;  %v1764_v58 = vpop.f32.mrb[52].mxu1  ;;  %v1685_v59 = vpop.f32.mrb[53].mxu0 }
 0x231   : > { %v1686_v60 = vadd.f32 %v1685_v59, %v1684_v56  ;;  %v1765_v61 = vpop.f32.mrb[53].mxu1 }
 0x232   : > { %1259 = vst.msk [vmem:[%s2721_s11 + $0x48] sm:$0xff] %vm1249_vm0, %v1216_v57  ;;  %v1766_v62 = vadd.f32 %v1765_v61, %v1764_v58  ;;  %1300 = vrot.lane.b32.xlu1 %v1216_v57, %s2101_s13 }
 0x233   : > { %v1687_v63 = vpop.f32.mrb[54].mxu0 }
 0x234   : > { %v1221_v1 = vadd.f32 %v1766_v62, %v1686_v60  ;;  %v1767_v2 = vpop.f32.mrb[54].mxu1  ;;  %v1688_v3 = vpop.f32.mrb[55].mxu0 }
 0x235   : > { %v1689_v4 = vadd.f32 %v1688_v3, %v1687_v63  ;;  %v1768_v5 = vpop.f32.mrb[55].mxu1 }
 0x236   : > { %1260 = vst.msk [vmem:[%s2721_s11 + $0x50] sm:$0xff] %vm1249_vm0, %v1221_v1  ;;  %v1769_v6 = vadd.f32 %v1768_v5, %v1767_v2  ;;  %1302 = vrot.lane.b32.xlu0 %v1221_v1, %s2101_s13 }
 0x237   : > { %v1690_v7 = vpop.f32.mrb[56].mxu0 }
 0x238   : > { %v1226_v8 = vadd.f32 %v1769_v6, %v1689_v4  ;;  %v1770_v9 = vpop.f32.mrb[56].mxu1  ;;  %v1691_v10 = vpop.f32.mrb[57].mxu0 }
 0x239   : > { %v1692_v11 = vadd.f32 %v1691_v10, %v1690_v7  ;;  %v1771_v12 = vpop.f32.mrb[57].mxu1 }
 0x23a   : > { %1261 = vst.msk [vmem:[%s2721_s11 + $0x58] sm:$0xff] %vm1249_vm0, %v1226_v8  ;;  %v1772_v13 = vadd.f32 %v1771_v12, %v1770_v9  ;;  %1304 = vrot.lane.b32.xlu1 %v1226_v8, %s2101_s13 }
 0x23b   : > { %v1693_v14 = vpop.f32.mrb[58].mxu0 }
 0x23c   : > { %v1231_v15 = vadd.f32 %v1772_v13, %v1692_v11  ;;  %v1773_v16 = vpop.f32.mrb[58].mxu1  ;;  %v1694_v17 = vpop.f32.mrb[59].mxu0 }
 0x23d   : > { %v1695_v18 = vadd.f32 %v1694_v17, %v1693_v14  ;;  %v1774_v19 = vpop.f32.mrb[59].mxu1 }
 0x23e   : > { %1262 = vst.msk [vmem:[%s2721_s11 + $0x60] sm:$0xff] %vm1249_vm0, %v1231_v15  ;;  %v1775_v20 = vadd.f32 %v1774_v19, %v1773_v16  ;;  %1306 = vrot.lane.b32.xlu0 %v1231_v15, %s2101_s13 }
 0x23f   : > { %v1696_v21 = vpop.f32.mrb[60].mxu0 }
 0x240   : > { %v1236_v22 = vadd.f32 %v1775_v20, %v1695_v18  ;;  %v1776_v23 = vpop.f32.mrb[60].mxu1  ;;  %v1697_v24 = vpop.f32.mrb[61].mxu0 }
 0x241   : > { %v1698_v25 = vadd.f32 %v1697_v24, %v1696_v21  ;;  %v1777_v0 = vpop.f32.mrb[61].mxu1 }
 0x242   : > { %1263 = vst.msk [vmem:[%s2721_s11 + $0x68] sm:$0xff] %vm1249_vm0, %v1236_v22  ;;  %v1778_v26 = vadd.f32 %v1777_v0, %v1776_v23  ;;  %1308 = vrot.lane.b32.xlu1 %v1236_v22, %s2101_s13 }
 0x243   : > { %v1699_v27 = vpop.f32.mrb[62].mxu0 }
 0x244   : > { %v1241_v28 = vadd.f32 %v1778_v26, %v1698_v25  ;;  %v1779_v29 = vpop.f32.mrb[62].mxu1  ;;  %v1700_v30 = vpop.f32.mrb[63].mxu0 }
 0x245   : > { %v1701_v31 = vadd.f32 %v1700_v30, %v1699_v27  ;;  %v1780_v32 = vpop.f32.mrb[63].mxu1 }
 0x246   : > { %1264 = vst.msk [vmem:[%s2721_s11 + $0x70] sm:$0xff] %vm1249_vm0, %v1241_v28  ;;  %v1781_v33 = vadd.f32 %v1780_v32, %v1779_v29  ;;  %1310 = vrot.lane.b32.xlu0 %v1241_v28, %s2101_s13 }
 0x248   : > { %v1246_v34 = vadd.f32 %v1781_v33, %v1701_v31 }
 0x24a   : > { %1265 = vst.msk [vmem:[%s2721_s11 + $0x78] sm:$0xff] %vm1249_vm0, %v1246_v34  ;;  %1312 = vrot.lane.b32.xlu1 %v1246_v34, %s2101_s13 }
 0x280   : > { %v1283_v35 = vpop.permute.xlu0 %1282 }
 0x281   : > { %1330 = vxpose.xlu0.b32.start [1/16] (narrow) %v1283_v35, 8 }
 0x284   : > { %v1285_v36 = vpop.permute.xlu0 %1284 }
 0x285   : > { %1331 = vxpose.xlu0.b32.cont [2/16] (narrow) %v1285_v36, 8 }
 0x286   : > { %2010 = shalt.err (!%p2007_p4)
}
 0x287   : > { %s2011_s29 = scalar_lea.hbm %s2776_s14, 4096  ;;  %s2015_s11 = scalar_lea.hbm %s2856_s3, 8192 }
 0x288   : > { %p2012_p5 = scmp.ne.s32.totalorder %s2776_s14, %s2011_s29  ;;  %p2016_p1 = scmp.lt.u32.totalorder %s2776_s14, %s2856_s3 }
 0x289   : > { %p2017_p3 = scmp.lt.u32.totalorder %s2015_s11, %s2011_s29  ;;  %p2019_p11 = scmp.lt.u32.totalorder %s2011_s29, %s2776_s14 }
 0x28a   : > { %p2013_p7 = pnand %p2012_p5, %p2865_p12 }
 0x28b   : > { %p2018_p6 = por %p2017_p3, %p2016_p1 }
 0x28c   : > { %p2014_p9 = pneg %p2013_p7 }
 0x28d   : > { %p2020_p13 = por %p2019_p11, %p2018_p6 }
 0x28f   : > { %p2021_p8 = pnand %p2020_p13, %p2014_p9 }
 0x291   : > { %2024 = shalt.err (!%p2021_p8)
}
 0x292   : > { %s2103_s26 = smov 256   ;;  %s2104_s12 = smov 16   ;;  %v1287_v37 = vpop.permute.xlu1 %1286  ;;  %v1291_v39 = vpop.permute.xlu0 %1290 }
 0x293   : > { %1912 = dma.vmem_to_hbm [thread:$0]  (%p2865_p12), %s2778_s25, 4096, %s2776_s14, %s1364_s15, %s2103_s26, %s2103_s26, %s2104_s12   ;;  %1332 = vxpose.xlu0.b32.cont [3/16] (narrow) %v1287_v37, 8 }
 0x294   : > { %s1544_s25 = sshll.u32 %s2240_s23, 2  ;;  %s1584_s16 = sshll.u32 %s2157_s22, 6 }
 0x295   : > { %s253_s14 = scalar_lea.vmem [#allocation6], %s1544_s25  ;;  %s2811_s28 = scalar_lea.hbm %s2857_s4, %s1584_s16 }
 0x296   : > { %v1289_v38 = vpop.permute.xlu1 %1288  ;;  %s1404_s15 = sshll.u32 %s253_s14, 4  ;;  %s1369_s29 = scalar_lea.sflag [#allocation7], %s2240_s23  ;;  %s2806_s15 = int_to_ptr.vmem [resolvable:$true] %s1404_s15 }
 0x297   : > { %1333 = vxpose.xlu0.b32.cont [4/16] (narrow) %v1289_v38, 8  ;;  %s2025_s9 = scalar_lea.vmem %s2806_s15, 64  ;;  %s2105_s10 = smov [#allocation6]  }
 0x298   : > { %v1295_v41 = vpop.permute.xlu0 %1294  ;;  %p2026_p10 = scmp.ne.s32.totalorder %s2806_s15, %s2025_s9  ;;  %s2029_s22 = sshll.u32 %s2105_s10, 4  ;;  %s2030_s22 = int_to_ptr.vmem [resolvable:$false] %s2029_s22 }
 0x299   : > { %s2031_s11 = scalar_lea.vmem %s2030_s22, 128  ;;  %p2032_p4 = scmp.lt.s32.totalorder %s2806_s15, %s2030_s22 }
 0x29a   : > { %v1293_v40 = vpop.permute.xlu1 %1292  ;;  %p2027_p0 = pnand %p2026_p10, %p2865_p12  ;;  %p2033_p5 = scmp.lt.s32.totalorder %s2031_s11, %s2025_s9 }
 0x29b   : > { %1334 = vxpose.xlu0.b32.cont [5/16] (narrow) %v1291_v39, 8 }
 0x29c   : > { %p2028_p2 = pneg %p2027_p0  ;;  %p2034_p7 = por %p2033_p5, %p2032_p4 }
 0x29e   : > { %v1297_v42 = vpop.permute.xlu1 %1296  ;;  %p2035_p9 = pnand %p2034_p7, %p2028_p2 }
 0x29f   : > { %1335 = vxpose.xlu0.b32.cont [6/16] (narrow) %v1293_v40, 8 }
 0x2a0   : > { %v1299_v43 = vpop.permute.xlu0 %1298 }
 0x2a3   : > { %1336 = vxpose.xlu0.b32.cont [7/16] (narrow) %v1295_v41, 8 }
 0x2a4   : > { %v1301_v44 = vpop.permute.xlu1 %1300 }
 0x2a7   : > { %1337 = vxpose.xlu0.b32.cont [8/16] (narrow) %v1297_v42, 8 }
 0x2a8   : > { %v1303_v45 = vpop.permute.xlu0 %1302 }
 0x2ab   : > { %1338 = vxpose.xlu0.b32.cont [9/16] (narrow) %v1299_v43, 8 }
 0x2ac   : > { %v1305_v46 = vpop.permute.xlu1 %1304 }
 0x2af   : > { %1339 = vxpose.xlu0.b32.cont [10/16] (narrow) %v1301_v44, 8 }
 0x2b0   : > { %v1307_v47 = vpop.permute.xlu0 %1306 }
 0x2b3   : > { %1340 = vxpose.xlu0.b32.cont [11/16] (narrow) %v1303_v45, 8 }
 0x2b4   : > { %v1309_v48 = vpop.permute.xlu1 %1308 }
 0x2b7   : > { %1341 = vxpose.xlu0.b32.cont [12/16] (narrow) %v1305_v46, 8 }
 0x2b8   : > { %v1311_v49 = vpop.permute.xlu0 %1310 }
 0x2bb   : > { %1342 = vxpose.xlu0.b32.cont [13/16] (narrow) %v1307_v47, 8 }
 0x2bc   : > { %v1313_v50 = vpop.permute.xlu1 %1312 }
 0x2bf   : > { %1343 = vxpose.xlu0.b32.cont [14/16] (narrow) %v1309_v48, 8 }
 0x2c3   : > { %1344 = vxpose.xlu0.b32.cont [15/16] (narrow) %v1311_v49, 8 }
 0x2c7   : > { %1345 = vxpose.xlu0.b32.end [16/16] (narrow) %v1313_v50, 8 }
 0x30b   : > { %v1346_v51 = vpop.trf.xlu0 }
 0x30c   : > { %1362 = vst [vmem:[%s253_s14] sm:$0xf] %v1346_v51 }
 0x30d   : > { %2038 = shalt.err (!%p2035_p9)
}
 0x30e   : > { %s2039_s23 = scalar_lea.hbm %s2811_s28, 64  ;;  %s2043_s26 = scalar_lea.hbm %s2857_s4, 128 }
 0x30f   : > { %p2040_p1 = scmp.ne.s32.totalorder %s2811_s28, %s2039_s23  ;;  %p2044_p11 = scmp.lt.u32.totalorder %s2811_s28, %s2857_s4 }
 0x310   : > { %p2045_p13 = scmp.lt.u32.totalorder %s2043_s26, %s2039_s23  ;;  %p2047_p10 = scmp.lt.u32.totalorder %s2039_s23, %s2811_s28 }
 0x311   : > { %p2041_p3 = pnand %p2040_p1, %p2865_p12 }
 0x312   : > { %p2046_p8 = por %p2045_p13, %p2044_p11 }
 0x313   : > { %p2042_p6 = pneg %p2041_p3 }
 0x314   : > { %p2048_p0 = por %p2047_p10, %p2046_p8 }
 0x316   : > { %p2049_p2 = pnand %p2048_p0, %p2042_p6 }
 0x318   : > { %2052 = shalt.err (!%p2049_p2)
}
 0x319   : > { %1913 = dma.vmem_to_hbm [thread:$0]  (%p2865_p12), %s2806_s15, 64, %s2811_s28, %s1369_s29  }
 0x31a PF: > { %s1420_s14 = sand.u32 1, %s2083_s18   ;;  %p2866_p4 = scmp.ne.s32.totalorder %s2863_s6, 0 }
 0x31b   : > { %p2867_p5 = scmp.ge.s32.totalorder %s2095_s21, 2  ;;  %s1421_s16 = scalar_lea.sflag [#allocation4], %s1420_s14 }
 0x31d   : > { %p1921_p7 = pnand %p2867_p5, %p2866_p4 }
 0x31f   : > { %2074 = dma.done.wait (!%p1921_p7), %s1421_s16, 4096  }
 0x320   : > { %2076 = vsyncadd (!%p1921_p7), %s1421_s16, 4294963200  ;;  %s1430_s8 = scalar_lea.sflag [#allocation7], %s1420_s14 }
 0x321   : > { %2078 = dma.done.wait (!%p1921_p7), %s1430_s8, 64  }
 0x322   : > { %2080 = vsyncadd (!%p1921_p7), %s1430_s8, 4294967232  ;;  %p22_p12 = scmp.ge.s32.totalorder %s2161_s24, 4   ;;  %s2868_s18 = smov %s2087_s19 }
 0x323   : > { %s2869_s19 = smov %s2091_s20  ;;  %s2870_s20 = smov %s2173_s27 }
 0x324   : > { %s2871_s21 = smov %s2161_s24  ;;  %24 = sbr.rel (!%p22_p12) target bundleno = 7 (0x7), region = 106 }
 0x32b   :  { %1443 = vsyncpa [#allocation3], 1 }
 0x32c   :  { %1445 = vsyncpa [#allocation3 + $0x1], 1 }
 0x32d   :  { %1446 = vsyncpa [#allocation4], 1 }
 0x32e   :  { %1448 = vsyncpa [#allocation4 + $0x1], 1 }
 0x32f   :  { %1449 = vsyncpa [#allocation7], 1 }
 0x330   :  { %1451 = vsyncpa [#allocation7 + $0x1], 1 }

</bundles_post_ra>
